<compile_context>
chip_gen: v6e
topology: v6e:2x2x1
jax: 0.10.0
libtpu: 0.0.40
codegen_flags: <defaults>
</compile_context>

<pallas_src>
import numpy as np
import jax
import jax.numpy as jnp
from jax.experimental import pallas as pl
from jax.experimental.pallas import tpu as pltpu

_LANE = 128
_SUBLANE = 8


def _round_up(x, m):
    return (x + m - 1) // m * m


def _vmem_capacity_bytes():
    try:
        return int(pltpu.get_tpu_info().vmem_capacity_bytes)
    except Exception:
        return 64 * 1024 * 1024          # conservative: v7x per-core VMEM


# --------------------------------------------------------------------------
# One-time parameter preparation (pad to lane multiples, cast to compute dtype)
# --------------------------------------------------------------------------
def prepare_dense_params(params, *, compute_dtype=jnp.bfloat16):
    """Pad every channel dim to a multiple of 128 and cast weights ONCE.

    params: list of (W, b) with W stored as (in_dim, out_dim), b as (out_dim,).
    Returns a dict consumed by `dense_layer`.
    """
    dims = [params[0][0].shape[0]] + [W.shape[1] for (W, _) in params]
    dims_p = [_round_up(d, _LANE) for d in dims]

    flat = []
    for l, (W, b) in enumerate(params):
        d_in, d_out = W.shape
        Wp = jnp.pad(W.astype(compute_dtype),
                     ((0, dims_p[l] - d_in), (0, dims_p[l + 1] - d_out)))
        bp = jnp.pad(b.astype(jnp.float32),
                     (0, dims_p[l + 1] - d_out)).reshape(1, -1)
        flat += [Wp, bp]

    return dict(flat=tuple(flat), dims=tuple(dims), dims_p=tuple(dims_p),
                compute_dtype=compute_dtype, n_layers=len(params))


# --------------------------------------------------------------------------
# Kernel body:  h = tanh(h @ W_l + b_l)  for l in range(n_layers)
# --------------------------------------------------------------------------
def _make_dense_kernel(n_layers, compute_dtype):
    def kernel(x_ref, *refs):
        out_ref = refs[2 * n_layers]
        h = x_ref[...]                                   # (tm, d0_pad)
        for l in range(n_layers):
            W = refs[2 * l][...]                         # (d_in_pad, d_out_pad)
            b = refs[2 * l + 1][...]                     # (1, d_out_pad) f32
            # MXU matmul, f32 accumulation.  astype is a no-op when h is
            # already in compute_dtype (layer 0 with bf16 inputs).
            acc = jnp.dot(h.astype(compute_dtype), W,
                          preferred_element_type=jnp.float32)
            h = jnp.tanh(acc + b)                        # f32 bias+tanh (EUP)
        out_ref[...] = h.astype(out_ref.dtype)
    return kernel


# --------------------------------------------------------------------------
# Wrapper
# --------------------------------------------------------------------------
def dense_layer(x, prepared, *, tm=512, out_dtype=jnp.float32,
                single_buffer_weights=True):
    """DenseLayer forward.

    x:        (..., in_dim)
    prepared: output of prepare_dense_params
    Returns (..., out_dim) in out_dtype.
    """
    flat_params = prepared["flat"]
    dims, dims_p = prepared["dims"], prepared["dims_p"]
    compute_dtype = prepared["compute_dtype"]
    n_layers = prepared["n_layers"]
    in_dim, out_dim = dims[0], dims[-1]
    d0_p, dl_p = dims_p[0], dims_p[-1]

    lead = x.shape[:-1]
    assert x.shape[-1] == in_dim, "input feature dim mismatch"
    rows = int(np.prod(lead)) if lead else 1
    x_flat = x.reshape(rows, in_dim)

    # ---------------- row tile selection ---------------------------------
    tm_eff = max(_SUBLANE,
                 min(_round_up(tm, _SUBLANE), _round_up(rows, _SUBLANE)))
    # Guarantee >= 2 grid steps when rows permit (two TensorCores on v7x).
    if rows > 2 * _SUBLANE and _round_up(rows, tm_eff) // tm_eff < 2:
        tm_eff = max(_SUBLANE, _round_up((rows + 1) // 2, _SUBLANE))

    # ---------------- VMEM budget check -----------------------------------
    act_bytes = jnp.dtype(compute_dtype).itemsize
    out_bytes = jnp.dtype(out_dtype).itemsize
    weight_bytes = sum(int(np.prod(p.shape)) * p.dtype.itemsize
                       for p in flat_params)
    wbuf_count = 1 if single_buffer_weights else 2
    budget = int(0.75 * _vmem_capacity_bytes())     # ~48 MiB v7x, ~96 MiB v5e/v6e

    def vmem_need(tm_):
        io = 2 * tm_ * d0_p * act_bytes + 2 * tm_ * dl_p * out_bytes
        live = 3 * tm_ * max(dims_p) * 4            # h / acc f32 intermediates
        return io + wbuf_count * weight_bytes + live

    while tm_eff > _SUBLANE and vmem_need(tm_eff) > budget:
        tm_eff = max(_SUBLANE, _round_up(tm_eff // 2, _SUBLANE))

    rows_p = _round_up(rows, tm_eff)
    grid = (rows_p // tm_eff,)

    # ---------------- activation staging (skip pad when aligned) ----------
    x_cast = x_flat.astype(compute_dtype)           # halves DMA bytes for bf16
    if rows_p == rows and d0_p == in_dim:
        x_p = x_cast
    else:
        x_p = jnp.pad(x_cast, ((0, rows_p - rows), (0, d0_p - in_dim)))

    # ---------------- specs ------------------------------------------------
    x_spec = pl.BlockSpec((tm_eff, d0_p), lambda i: (i, 0))
    out_specs = pl.BlockSpec((tm_eff, dl_p), lambda i: (i, 0))
    out_shape = jax.ShapeDtypeStruct((rows_p, dl_p), out_dtype)

    # Whole-array, constant-index weight/bias blocks -> resident in VMEM.
    weight_specs_db = [pl.BlockSpec(p.shape, lambda i: (0, 0))
                       for p in flat_params]
    weight_specs_sb = [pl.BlockSpec(p.shape, lambda i: (0, 0),
                                    pipeline_mode=pl.Buffered(1))
                       for p in flat_params]

    kernel = _make_dense_kernel(n_layers, compute_dtype)
    cp = pltpu.CompilerParams(dimension_semantics=("parallel",),
                              vmem_limit_bytes=budget)

    def run(weight_specs):
        return pl.pallas_call(
            kernel,
            grid=grid,
            in_specs=[x_spec] + weight_specs,
            out_specs=out_specs,
            out_shape=out_shape,
            compiler_params=cp,
        )(x_p, *flat_params)

    if single_buffer_weights:
        try:
            y_p = run(weight_specs_sb)
        except Exception:
            # Fallback for Pallas builds that reject single-buffered specs.
            y_p = run(weight_specs_db)
    else:
        y_p = run(weight_specs_db)

    # ---------------- unpad (skip when aligned) ----------------------------
    if rows_p == rows and dl_p == out_dim:
        y = y_p
    else:
        y = y_p[:rows, :out_dim]
    return y.reshape(lead + (out_dim,))


# --------------------------------------------------------------------------
# Pure-JAX reference mirroring DenseLayer.forward
# --------------------------------------------------------------------------
def reference_forward(x, params):
    h = x.reshape(-1, x.shape[-1]).astype(jnp.float32)
    for (W, b) in params:
        h = jnp.tanh(h @ W + b)
    return h.reshape(x.shape[:-1] + (params[-1][0].shape[1],))


if __name__ == "__main__":
    key = jax.random.PRNGKey(0)

    # Shapes consistent with DenseLayer(in_dim, sizes): a (B, T, in_dim)
    # activation through two Linear+tanh layers.  Non-multiple-of-128 dims
    # exercise the lane-padding path; B*T=512 exercises the 2-step grid split.
    B, T = 4, 128
    IN_DIM = 200
    SIZES = [192, 96]

    dims = [IN_DIM] + SIZES
    params = []
    for i in range(len(dims) - 1):
        key, kw, kb = jax.random.split(key, 3)
        limit = float(np.sqrt(6.0 / (dims[i] + dims[i + 1])))   # xavier-uniform
        W = jax.random.uniform(kw, (dims[i], dims[i + 1]), jnp.float32,
                               minval=-limit, maxval=limit)
        b = 0.1 * jax.random.normal(kb, (dims[i + 1],), jnp.float32)
        params.append((W, b))

    key, kx = jax.random.split(key)
    x = jax.random.normal(kx, (B, T, IN_DIM), jnp.float32)

    y_ref = reference_forward(x, params)

    # Default path: bf16 operands end-to-end (MXU-native on all generations),
    # f32 accumulation and f32 elementwise math, f32 output.
    prep_bf16 = prepare_dense_params(params, compute_dtype=jnp.bfloat16)
    y_bf16 = dense_layer(x, prep_bf16, tm=512)
    jax.block_until_ready(y_bf16)
    np.testing.assert_allclose(np.asarray(y_bf16), np.asarray(y_ref),
                               rtol=5e-2, atol=5e-2)
    assert y_bf16.shape == (B, T, SIZES[-1])

    # f32-operand path (tighter numerics).
    # TODO(synk): if bit-exact f32 MXU matmuls are required, request higher
    # precision explicitly; default Mosaic f32 matmul passes are bf16-class.
    prep_f32 = prepare_dense_params(params, compute_dtype=jnp.float32)
    y_f32 = dense_layer(x, prep_f32, tm=512)
    jax.block_until_ready(y_f32)
    np.testing.assert_allclose(np.asarray(y_f32), np.asarray(y_ref),
                               rtol=2e-2, atol=2e-2)
    assert y_f32.shape == (B, T, SIZES[-1])

    print("KERNEL_OK")
</pallas_src>

<mosaic_0001>
module attributes {stable_mosaic.version = 11 : i64} {
  func.func @kernel(%arg0: i32, %arg1: memref<256x256xbf16, #tpu.memory_space<vmem>>, %arg2: memref<256x256xbf16, #tpu.memory_space<vmem>>, %arg3: memref<1x256xf32, #tpu.memory_space<vmem>>, %arg4: memref<256x128xbf16, #tpu.memory_space<vmem>>, %arg5: memref<1x128xf32, #tpu.memory_space<vmem>>, %arg6: memref<256x128xf32, #tpu.memory_space<vmem>>) attributes {dimension_semantics = [#tpu.dimension_semantics<parallel>], iteration_bounds = array<i64: 2>, scalar_prefetch = 0 : i64, scratch_operands = 0 : i64, tpu.core_type = #tpu.core_type<tc>, window_params = [{transform_indices = @transform_0, window_bounds = array<i64: 256, 256>}, {pipeline_mode = #tpu.pipeline_mode<synchronous>, transform_indices = @transform_1, window_bounds = array<i64: 256, 256>}, {pipeline_mode = #tpu.pipeline_mode<synchronous>, transform_indices = @transform_2, window_bounds = array<i64: 1, 256>}, {pipeline_mode = #tpu.pipeline_mode<synchronous>, transform_indices = @transform_3, window_bounds = array<i64: 256, 128>}, {pipeline_mode = #tpu.pipeline_mode<synchronous>, transform_indices = @transform_4, window_bounds = array<i64: 1, 128>}, {transform_indices = @transform_5, window_bounds = array<i64: 256, 128>}]} {
    %c0 = arith.constant 0 : index
    %c0_0 = arith.constant 0 : index
    %0 = vector.load %arg1[%c0, %c0_0] : memref<256x256xbf16, #tpu.memory_space<vmem>>, vector<256x256xbf16>
    %c0_1 = arith.constant 0 : index
    %c0_2 = arith.constant 0 : index
    %1 = vector.load %arg2[%c0_1, %c0_2] : memref<256x256xbf16, #tpu.memory_space<vmem>>, vector<256x256xbf16>
    %c0_3 = arith.constant 0 : index
    %c0_4 = arith.constant 0 : index
    %2 = vector.load %arg3[%c0_3, %c0_4] : memref<1x256xf32, #tpu.memory_space<vmem>>, vector<1x256xf32>
    %cst = arith.constant dense<0.000000e+00> : vector<256x256xf32>
    %3 = tpu.matmul %0, %1, %cst {dimension_numbers = #tpu.dot_dimension_numbers<[1], [0], [0], [1], [0, 0, 1, 1], [], []>} : vector<256x256xbf16>, vector<256x256xbf16>, vector<256x256xf32> -> vector<256x256xf32>
    %4 = vector.broadcast %2 : vector<1x256xf32> to vector<256x256xf32>
    %5 = arith.addf %3, %4 : vector<256x256xf32>
    %6 = math.tanh %5 : vector<256x256xf32>
    %c0_5 = arith.constant 0 : index
    %c0_6 = arith.constant 0 : index
    %7 = vector.load %arg4[%c0_5, %c0_6] : memref<256x128xbf16, #tpu.memory_space<vmem>>, vector<256x128xbf16>
    %c0_7 = arith.constant 0 : index
    %c0_8 = arith.constant 0 : index
    %8 = vector.load %arg5[%c0_7, %c0_8] : memref<1x128xf32, #tpu.memory_space<vmem>>, vector<1x128xf32>
    %9 = arith.truncf %6 : vector<256x256xf32> to vector<256x256xbf16>
    %cst_9 = arith.constant dense<0.000000e+00> : vector<256x128xf32>
    %10 = tpu.matmul %9, %7, %cst_9 {dimension_numbers = #tpu.dot_dimension_numbers<[1], [0], [0], [1], [0, 0, 1, 1], [], []>} : vector<256x256xbf16>, vector<256x128xbf16>, vector<256x128xf32> -> vector<256x128xf32>
    %11 = vector.broadcast %8 : vector<1x128xf32> to vector<256x128xf32>
    %12 = arith.addf %10, %11 : vector<256x128xf32>
    %13 = math.tanh %12 : vector<256x128xf32>
    %c0_10 = arith.constant 0 : index
    %c0_11 = arith.constant 0 : index
    %14 = vector.load %arg6[%c0_10, %c0_11] : memref<256x128xf32, #tpu.memory_space<vmem>>, vector<256x128xf32>
    tpu.vector_store %arg6[%c0_10, %c0_11], %13 {strides = array<i32>} : memref<256x128xf32, #tpu.memory_space<vmem>>, vector<256x128xf32>,
    return
  }
  func.func @transform_0(%arg0: i32) -> (i32, i32) {
    %c0_i32 = arith.constant 0 : i32
    %c0_i32_0 = arith.constant 0 : i32
    return %arg0, %c0_i32 : i32, i32
  }
  func.func @transform_1(%arg0: i32) -> (i32, i32) {
    %c0_i32 = arith.constant 0 : i32
    %c0_i32_0 = arith.constant 0 : i32
    %c0_i32_1 = arith.constant 0 : i32
    return %c0_i32, %c0_i32_0 : i32, i32
  }
  func.func @transform_2(%arg0: i32) -> (i32, i32) {
    %c0_i32 = arith.constant 0 : i32
    %c0_i32_0 = arith.constant 0 : i32
    %c0_i32_1 = arith.constant 0 : i32
    return %c0_i32, %c0_i32_0 : i32, i32
  }
  func.func @transform_3(%arg0: i32) -> (i32, i32) {
    %c0_i32 = arith.constant 0 : i32
    %c0_i32_0 = arith.constant 0 : i32
    %c0_i32_1 = arith.constant 0 : i32
    return %c0_i32, %c0_i32_0 : i32, i32
  }
  func.func @transform_4(%arg0: i32) -> (i32, i32) {
    %c0_i32 = arith.constant 0 : i32
    %c0_i32_0 = arith.constant 0 : i32
    %c0_i32_1 = arith.constant 0 : i32
    return %c0_i32, %c0_i32_0 : i32, i32
  }
  func.func @transform_5(%arg0: i32) -> (i32, i32) {
    %c0_i32 = arith.constant 0 : i32
    %c0_i32_0 = arith.constant 0 : i32
    return %arg0, %c0_i32 : i32, i32
  }
}

module attributes {stable_mosaic.version = 11 : i64} {
  func.func @kernel(%arg0: i32, %arg1: memref<256x256xbf16, #tpu.memory_space<vmem>>, %arg2: memref<256x256xbf16, #tpu.memory_space<vmem>>, %arg3: memref<1x256xf32, #tpu.memory_space<vmem>>, %arg4: memref<256x128xbf16, #tpu.memory_space<vmem>>, %arg5: memref<1x128xf32, #tpu.memory_space<vmem>>, %arg6: memref<256x128xf32, #tpu.memory_space<vmem>>) attributes {dimension_semantics = [#tpu.dimension_semantics<parallel>], iteration_bounds = array<i64: 2>, scalar_prefetch = 0 : i64, scratch_operands = 0 : i64, tpu.core_type = #tpu.core_type<tc>, window_params = [{transform_indices = @transform_0, window_bounds = array<i64: 256, 256>}, {pipeline_mode = #tpu.pipeline_mode<synchronous>, transform_indices = @transform_1, window_bounds = array<i64: 256, 256>}, {pipeline_mode = #tpu.pipeline_mode<synchronous>, transform_indices = @transform_2, window_bounds = array<i64: 1, 256>}, {pipeline_mode = #tpu.pipeline_mode<synchronous>, transform_indices = @transform_3, window_bounds = array<i64: 256, 128>}, {pipeline_mode = #tpu.pipeline_mode<synchronous>, transform_indices = @transform_4, window_bounds = array<i64: 1, 128>}, {transform_indices = @transform_5, window_bounds = array<i64: 256, 128>}]} {
    %c0 = arith.constant 0 : index
    %c0_0 = arith.constant 0 : index
    %0 = vector.load %arg1[%c0, %c0_0] : memref<256x256xbf16, #tpu.memory_space<vmem>>, vector<256x256xbf16>
    %c0_1 = arith.constant 0 : index
    %c0_2 = arith.constant 0 : index
    %1 = vector.load %arg2[%c0_1, %c0_2] : memref<256x256xbf16, #tpu.memory_space<vmem>>, vector<256x256xbf16>
    %c0_3 = arith.constant 0 : index
    %c0_4 = arith.constant 0 : index
    %2 = vector.load %arg3[%c0_3, %c0_4] : memref<1x256xf32, #tpu.memory_space<vmem>>, vector<1x256xf32>
    %cst = arith.constant dense<0.000000e+00> : vector<256x256xf32>
    %3 = tpu.matmul %0, %1, %cst {dimension_numbers = #tpu.dot_dimension_numbers<[1], [0], [0], [1], [0, 0, 1, 1], [], []>} : vector<256x256xbf16>, vector<256x256xbf16>, vector<256x256xf32> -> vector<256x256xf32>
    %4 = vector.broadcast %2 : vector<1x256xf32> to vector<256x256xf32>
    %5 = arith.addf %3, %4 : vector<256x256xf32>
    %6 = math.tanh %5 : vector<256x256xf32>
    %c0_5 = arith.constant 0 : index
    %c0_6 = arith.constant 0 : index
    %7 = vector.load %arg4[%c0_5, %c0_6] : memref<256x128xbf16, #tpu.memory_space<vmem>>, vector<256x128xbf16>
    %c0_7 = arith.constant 0 : index
    %c0_8 = arith.constant 0 : index
    %8 = vector.load %arg5[%c0_7, %c0_8] : memref<1x128xf32, #tpu.memory_space<vmem>>, vector<1x128xf32>
    %9 = arith.truncf %6 : vector<256x256xf32> to vector<256x256xbf16>
    %cst_9 = arith.constant dense<0.000000e+00> : vector<256x128xf32>
    %10 = tpu.matmul %9, %7, %cst_9 {dimension_numbers = #tpu.dot_dimension_numbers<[1], [0], [0], [1], [0, 0, 1, 1], [], []>} : vector<256x256xbf16>, vector<256x128xbf16>, vector<256x128xf32> -> vector<256x128xf32>
    %11 = vector.broadcast %8 : vector<1x128xf32> to vector<256x128xf32>
    %12 = arith.addf %10, %11 : vector<256x128xf32>
    %13 = math.tanh %12 : vector<256x128xf32>
    %c0_10 = arith.constant 0 : index
    %c0_11 = arith.constant 0 : index
    %14 = vector.load %arg6[%c0_10, %c0_11] : memref<256x128xf32, #tpu.memory_space<vmem>>, vector<256x128xf32>
    tpu.vector_store %arg6[%c0_10, %c0_11], %13 {strides = array<i32>} : memref<256x128xf32, #tpu.memory_space<vmem>>, vector<256x128xf32>,
    return
  }
  func.func @transform_0(%arg0: i32) -> (i32, i32) {
    %c0_i32 = arith.constant 0 : i32
    %c0_i32_0 = arith.constant 0 : i32
    return %arg0, %c0_i32 : i32, i32
  }
  func.func @transform_1(%arg0: i32) -> (i32, i32) {
    %c0_i32 = arith.constant 0 : i32
    %c0_i32_0 = arith.constant 0 : i32
    %c0_i32_1 = arith.constant 0 : i32
    return %c0_i32, %c0_i32_0 : i32, i32
  }
  func.func @transform_2(%arg0: i32) -> (i32, i32) {
    %c0_i32 = arith.constant 0 : i32
    %c0_i32_0 = arith.constant 0 : i32
    %c0_i32_1 = arith.constant 0 : i32
    return %c0_i32, %c0_i32_0 : i32, i32
  }
  func.func @transform_3(%arg0: i32) -> (i32, i32) {
    %c0_i32 = arith.constant 0 : i32
    %c0_i32_0 = arith.constant 0 : i32
    %c0_i32_1 = arith.constant 0 : i32
    return %c0_i32, %c0_i32_0 : i32, i32
  }
  func.func @transform_4(%arg0: i32) -> (i32, i32) {
    %c0_i32 = arith.constant 0 : i32
    %c0_i32_0 = arith.constant 0 : i32
    %c0_i32_1 = arith.constant 0 : i32
    return %c0_i32, %c0_i32_0 : i32, i32
  }
  func.func @transform_5(%arg0: i32) -> (i32, i32) {
    %c0_i32 = arith.constant 0 : i32
    %c0_i32_0 = arith.constant 0 : i32
    return %arg0, %c0_i32 : i32, i32
  }
}

</mosaic_0001>

<bundles_post_ra>
// kernel: tpu_custom_call.1
= control target key start
LH: loop header
LB: loop body
LE: loop exit
PB: predicated region body
PF: predicated region fallthrough
CT: control target
= control target key end

     0   :  { %10 = vsyncpa [#allocation3], 0  ;;  %s2584_s0 = inlined_call_operand.hbm [shape: bf16[512,256], index: 0, kind: input, shape index: {}]   ;;  %s2585_s1 = inlined_call_operand.hbm [shape: bf16[256,256], index: 1, kind: input, shape index: {}]   ;;  %s2586_s2 = inlined_call_operand.vmem [shape: f32[1,256], index: 2, kind: input, shape index: {}]   ;;  %s2587_s3 = inlined_call_operand.hbm [shape: bf16[256,128], index: 3, kind: input, shape index: {}]   ;;  %s2588_s4 = inlined_call_operand.vmem [shape: f32[1,128], index: 4, kind: input, shape index: {}]   ;;  %s2589_s5 = inlined_call_operand.hbm [shape: f32[512,128], index: 5, kind: output, shape index: {}]  }
   0x1   :  { %12 = vsyncpa [#allocation3 + $0x1], 0 }
   0x2   :  { %13 = vsyncpa [#allocation6], 0 }
   0x3   :  { %14 = vsyncpa [#allocation4], 0 }
   0x4   :  { %16 = vsyncpa [#allocation4 + $0x1], 0  ;;  %s2209_s18 = smov 0   ;;  %s2211_s19 = smov 0  }
   0x5   :  { %s2213_s20 = smov 0   ;;  %s2215_s21 = smov 0  }
   0x6 LB: > { %s2230_s22 = sadd.s32 4294967295, %s2167_s21   ;;  %s1427_s23 = sadd.s32 4294967294, %s2167_s21   ;;  %s2167_s21 = sphi %s2215_s21, %s2612_s21   ;;  %s2163_s20 = sphi %s2213_s20, %s2611_s20   ;;  %s2159_s19 = sphi %s2211_s19, %s2610_s19   ;;  %s2155_s18 = sphi %s2209_s18, %s2609_s18  }
   0x7   : > { %p42_p0 = scmp.ne.s32.totalorder %s2159_s19, %s2155_s18  ;;  %p2590_p1 = scmp.eq.s32.totalorder %s2230_s22, 0 }
   0x8   : > { %p150_p2 = scmp.eq.s32.totalorder %s2230_s22, 1  ;;  %p156_p3 = scmp.eq.s32.totalorder %s1427_s23, 1 }
   0x9   : > { %p2239_p4 = por %p2590_p1, %p42_p0  ;;  %p1428_p5 = scmp.ge.s32.totalorder %s2167_s21, 1 }
   0xa   : > { %p2244_p6 = por %p156_p3, %p42_p0  ;;  %p163_p7 = scmp.lt.s32.totalorder %s2167_s21, 3 }
   0xb   : > { %s2595_s24 = scalar_select %p2239_p4, 1, 0 }
   0xc   : > { %s2596_s25 = scalar_select %p2244_p6, 1, 0 }
   0xd   : > { %p2249_p8 = pnand %p1428_p5, %p163_p7  ;;  %s2169_s27 = smov [#allocation5]  }
   0xe   : > { %s175_s28 = sshll.u32 %s2169_s27, 4  ;;  %s2170_s30 = smov [#allocation7]   ;;  %s176_s28 = int_to_ptr.vmem [resolvable:$true] %s175_s28 }
   0xf   : > { %s2597_s26 = scalar_select %p2249_p8, 1, 0 }
  0x10   : > { %p1654_p9 = pneg %p2249_p8  ;;  %s191_s6 = sshll.u32 %s2170_s30, 4  ;;  %s192_s6 = int_to_ptr.vmem [resolvable:$true] %s191_s6 }
  0x11   : > { %s2030_s7 = scalar_lea.vmem %s176_s28, 4096  ;;  %p2038_p5 = scmp.lt.s32.totalorder %s176_s28, %s176_s28 }
  0x12   : > { %p2258_p11 = pnand %p1654_p9, %p2590_p1  ;;  %p2031_p13 = scmp.ne.s32.totalorder %s176_s28, %s2030_s7 }
  0x13   : > { %p2039_p7 = scmp.lt.s32.totalorder %s2030_s7, %s2030_s7 }
  0x14   : > { %p2021_p12 = pneg %p2258_p11 }
  0x15   : > { %p2040_p10 = por %p2039_p7, %p2038_p5 }
  0x16   : > { %p2033_p0 = pnand %p2031_p13, %p2021_p12 }
  0x18   : > { %p2034_p3 = pneg %p2033_p0 }
  0x1a   : > { %p2041_p9 = pnand %p2040_p10, %p2034_p3 }
  0x1c   : > { %2044 = shalt.err (!%p2041_p9)
}
  0x1d   : > { %s2591_s8 = smov 128   ;;  %s2172_s9 = smov 8  }
  0x1e   : > { %1657 = dma.hbm_to_vmem [thread:$0]  (!%p2258_p11), %s2585_s1, 4096, %s176_s28, [#allocation6], %s2591_s8, %s2591_s8, %s2172_s9  }
  0x1f   : > { %s2056_s12 = scalar_lea.vmem %s192_s6, 2048  ;;  %p2064_p10 = scmp.lt.s32.totalorder %s192_s6, %s192_s6 }
  0x20   : > { %p2057_p13 = scmp.ne.s32.totalorder %s192_s6, %s2056_s12  ;;  %p2065_p3 = scmp.lt.s32.totalorder %s2056_s12, %s2056_s12 }
  0x22   : > { %p2059_p0 = pnand %p2057_p13, %p2021_p12  ;;  %p2066_p7 = por %p2065_p3, %p2064_p10 }
  0x24   : > { %p2060_p5 = pneg %p2059_p0 }
  0x26   : > { %p2067_p9 = pnand %p2066_p7, %p2060_p5 }
  0x28   : > { %2070 = shalt.err (!%p2067_p9)
}
  0x29   : > { %s2173_s13 = smov 64   ;;  %s2174_s14 = smov 4  }
  0x2a   : > { %1660 = dma.hbm_to_vmem [thread:$0]  (!%p2258_p11), %s2587_s3, 2048, %s192_s6, [#allocation6], %s2173_s13, %s2173_s13, %s2174_s14  }
  0x2b   : > { %s2284_s17 = sadd.s32 1, %s2167_s21   ;;  %s29_s27 = sadd.s32 1, %s2163_s20 }
  0x2c   : > { %s26_s23 = ssub.s32 %s2167_s21, %s2284_s17  ;;  %p36_p13 = scmp.ne.s32.totalorder %s2163_s20, %s2159_s19 }
  0x2d   : > { %p27_p12 = scmp.eq.s32.totalorder %s26_s23, 0  ;;  %p37_p0 = scmp.eq.s32.totalorder %s2167_s21, 0 }
  0x2e   : > { %p2297_p10 = por %p150_p2, %p36_p13  ;;  %p1671_p3 = scmp.lt.s32.totalorder %s2167_s21, 2 }
  0x2f   : > { %s2293_s28 = scalar_select %p27_p12, %s2163_s20, %s29_s27  }
  0x30   : > { %p38_p5 = por %p37_p0, %p36_p13  ;;  %s208_s29 = sand.u32 1, %s2163_s20  }
  0x31   : > { %s2599_s30 = scalar_select %p2297_p10, 1, 0 }
  0x32   : > { %s1432_s7 = sshll.u32 %s208_s29, 8  ;;  %s1528_s6 = sshll.u32 %s2167_s21, 12 }
  0x33   : > { %s2307_s12 = scalar_lea.hbm %s2584_s0, %s1528_s6  ;;  %s212_s13 = scalar_lea.vmem [#allocation2], %s1432_s7 }
  0x34   : > { %s220_s14 = sshll.u32 %s212_s13, 4  ;;  %p2311_p2 = pnand %p1671_p3, %p38_p5  ;;  %s2309_s14 = int_to_ptr.vmem [resolvable:$true] %s220_s14 }
  0x35   : > { %s2315_s16 = scalar_lea.sflag [#allocation3], %s208_s29  ;;  %s2071_s23 = scalar_lea.hbm %s2307_s12, 4096 }
  0x36   : > { %p2072_p11 = scmp.ne.s32.totalorder %s2307_s12, %s2071_s23  ;;  %p2073_p7 = pneg %p2311_p2 }
  0x37   : > { %s2076_s7 = scalar_lea.hbm %s2584_s0, 8192  ;;  %p2077_p13 = scmp.lt.s32.totalorder %s2307_s12, %s2584_s0 }
  0x38   : > { %p2074_p9 = pnand %p2073_p7, %p2072_p11  ;;  %p2078_p0 = scmp.lt.s32.totalorder %s2076_s7, %s2071_s23 }
  0x3a   : > { %p2075_p12 = pneg %p2074_p9  ;;  %p2079_p5 = por %p2078_p0, %p2077_p13 }
  0x3c   : > { %p2080_p3 = pnand %p2079_p5, %p2075_p12 }
  0x3e   : > { %2083 = shalt.err (!%p2080_p3)
}
  0x3f   : > { %s2084_s29 = scalar_lea.vmem %s2309_s14, 4096  ;;  %s2175_s13 = smov [#allocation2]  }
  0x40   : > { %p2085_p1 = scmp.ne.s32.totalorder %s2309_s14, %s2084_s29  ;;  %s2089_s8 = sshll.u32 %s2175_s13, 4  ;;  %s2090_s8 = int_to_ptr.vmem [resolvable:$false] %s2089_s8 }
  0x41   : > { %s2091_s27 = scalar_lea.vmem %s2090_s8, 8192  ;;  %p2092_p9 = scmp.lt.s32.totalorder %s2309_s14, %s2090_s8 }
  0x42   : > { %p2087_p6 = pnand %p2085_p1, %p2073_p7  ;;  %p2093_p10 = scmp.lt.s32.totalorder %s2091_s27, %s2084_s29 }
  0x44   : > { %p2088_p11 = pneg %p2087_p6  ;;  %p2094_p4 = por %p2093_p10, %p2092_p9 }
  0x46   : > { %p2095_p8 = pnand %p2094_p4, %p2088_p11 }
  0x48   : > { %2098 = shalt.err (!%p2095_p8)
}
  0x49   : > { %s2601_s23 = smov 128   ;;  %p2602_p1 = scmp.ne.s32.totalorder %s2597_s26, 0 }
  0x4a   : > { %1664 = dma.hbm_to_vmem [thread:$0]  (!%p2311_p2), %s2307_s12, 4096, %s2309_s14, %s2315_s16, %s2601_s23, %s2601_s23, %s2172_s9  }
  0x4b   : > { %232 = sbr.rel (%p2602_p1) target bundleno = 718 (0x2ce), region = 40  ;;  %s2342_s6 = sand.u32 (!%p2602_p1), 1, %s2159_s19  }
  0x4c   : > { %s1437_s8 = sshll.u32 (!%p2602_p1), %s2342_s6, 8  ;;  %s235_s7 = scalar_lea.sflag (!%p2602_p1), [#allocation3], %s2342_s6 }
  0x4d   : > { %s2348_s15 = scalar_lea.vmem (!%p2602_p1), [#allocation2], %s1437_s8  ;;  %p2603_p4 = scmp.ne.s32.totalorder (!%p2602_p1), %s2595_s24, 0 }
  0x50   : > { %2142 = dma.done.wait (%p2603_p4), %s235_s7, 4096  }
  0x51   : > { %2144 = vsyncadd (%p2603_p4), %s235_s7, 4294963200  ;;  %p2604_p6 = scmp.eq.s32.totalorder %s2230_s22, 0 }
  0x53   : > { %2146 = dma.done.wait (%p2604_p6), [#allocation6], 6144   ;;  %p2605_p8 = pmov %p2604_p6 }
  0x54   : > { %v1715_v0 = vld [vmem:[#allocation5 + $0x74] ss:$8 sps:$4 sm:$0xff]   ;;  %v1717_v1 = vld [vmem:[#allocation5 + $0x70] ss:$8 sps:$4 sm:$0xff]   ;;  %v1718_v2 = vld [vmem:[#allocation5 + $0x64] ss:$8 sps:$4 sm:$0xff]  }
  0x55   : > { %2148 = vsyncadd (%p2605_p8), [#allocation6], 4294961152  ;;  %672 = vmatprep.subr.bf16.mxu0 %v1715_v0  ;;  %v1720_v3 = vld [vmem:[#allocation5 + $0x60] ss:$8 sps:$4 sm:$0xff]   ;;  %v1721_v4 = vld [vmem:[#allocation5 + $0x54] ss:$8 sps:$4 sm:$0xff]  }
  0x56   : > { %673 = vmatpush1.bf16.msra.mxu0 %v1717_v1  ;;  %v1723_v5 = vld [vmem:[#allocation5 + $0x50] ss:$8 sps:$4 sm:$0xff]   ;;  %v1724_v6 = vld [vmem:[#allocation5 + $0x44] ss:$8 sps:$4 sm:$0xff]   ;;  %v1726_v7 = vld [vmem:[#allocation5 + $0x40] ss:$8 sps:$4 sm:$0xff]  }
  0x57   : > { %674 = vmatprep.subr.bf16.mxu0 %v1718_v2  ;;  %v1727_v8 = vld [vmem:[#allocation5 + $0x34] ss:$8 sps:$4 sm:$0xff]   ;;  %v1729_v9 = vld [vmem:[#allocation5 + $0x30] ss:$8 sps:$4 sm:$0xff]   ;;  %v1730_v10 = vld [vmem:[#allocation5 + $0x24] ss:$8 sps:$4 sm:$0xff]  }
  0x58   : > { %v1732_v11 = vld [vmem:[#allocation5 + $0x20] ss:$8 sps:$4 sm:$0xff]   ;;  %v1733_v12 = vld [vmem:[#allocation5 + $0x14] ss:$8 sps:$4 sm:$0xff]   ;;  %v1765_v13 = vld [vmem:[%s2348_s15 + $0x4] ss:$8 sps:$4 sm:$0xff]  }
  0x59   : > { %v1735_v14 = vld [vmem:[#allocation5 + $0x10] ss:$8 sps:$4 sm:$0xff]   ;;  %v1736_v15 = vld [vmem:[#allocation5 + $0x4] ss:$8 sps:$4 sm:$0xff]   ;;  %704 = vmatprep.mubr.bf16.mxu0 %v1765_v13  ;;  %v1738_v16 = vld [vmem:[#allocation5] ss:$8 sps:$4 sm:$0xff]  }
  0x5a   : > { %675 = vmatpush1.bf16.msra.mxu0 %v1720_v3  ;;  %v1739_v17 = vld [vmem:[#allocation5 + $0xf4] ss:$8 sps:$4 sm:$0xff]   ;;  %v1741_v18 = vld [vmem:[#allocation5 + $0xf0] ss:$8 sps:$4 sm:$0xff]   ;;  %v1742_v19 = vld [vmem:[#allocation5 + $0xe4] ss:$8 sps:$4 sm:$0xff]  }
  0x5b   : > { %676 = vmatprep.subr.bf16.mxu0 %v1721_v4  ;;  %v1744_v20 = vld [vmem:[#allocation5 + $0xe0] ss:$8 sps:$4 sm:$0xff]   ;;  %v1745_v21 = vld [vmem:[#allocation5 + $0xd4] ss:$8 sps:$4 sm:$0xff]   ;;  %v1747_v22 = vld [vmem:[#allocation5 + $0xd0] ss:$8 sps:$4 sm:$0xff]  }
  0x5c   : > { %v1748_v23 = vld [vmem:[#allocation5 + $0xc4] ss:$8 sps:$4 sm:$0xff]   ;;  %v1750_v24 = vld [vmem:[#allocation5 + $0xc0] ss:$8 sps:$4 sm:$0xff]   ;;  %v1751_v25 = vld [vmem:[#allocation5 + $0xb4] ss:$8 sps:$4 sm:$0xff]  }
  0x5d   : > { %v1753_v26 = vld [vmem:[#allocation5 + $0xb0] ss:$8 sps:$4 sm:$0xff]   ;;  %v1754_v27 = vld [vmem:[#allocation5 + $0xa4] ss:$8 sps:$4 sm:$0xff]   ;;  %v1756_v28 = vld [vmem:[#allocation5 + $0xa0] ss:$8 sps:$4 sm:$0xff]  }
  0x5e   : > { %677 = vmatpush1.bf16.msra.mxu0 %v1723_v5  ;;  %v1757_v29 = vld [vmem:[#allocation5 + $0x94] ss:$8 sps:$4 sm:$0xff]   ;;  %v1759_v30 = vld [vmem:[#allocation5 + $0x90] ss:$8 sps:$4 sm:$0xff]   ;;  %v1760_v31 = vld [vmem:[#allocation5 + $0x84] ss:$8 sps:$4 sm:$0xff]  }
  0x5f   : > { %678 = vmatprep.subr.bf16.mxu0 %v1724_v6  ;;  %v1811_v32 = vld [vmem:[#allocation7 + $0x78] sm:$0xff]   ;;  %v1813_v34 = vld [vmem:[#allocation7 + $0x70] sm:$0xff]   ;;  %v1762_v35 = vld [vmem:[#allocation5 + $0x80] ss:$8 sps:$4 sm:$0xff]   ;;  %s2472_s14 = scalar_lea.vmem [#allocation8], %s1437_s8  ;;  %s1529_s16 = sshll.u32 %s2230_s22, 12 }
  0x60   : > { %v1812_v33 = vld [vmem:[#allocation7 + $0x38] sm:$0xff]   ;;  %1530 = vmatprep.subr.bf16.mxu1 %v1811_v32  ;;  %v1814_v36 = vld [vmem:[#allocation7 + $0x30] sm:$0xff]   ;;  %v1763_v37 = vld [vmem:[%s2348_s15] ss:$8 sps:$4 sm:$0xff]   ;;  %s1335_s10 = sshll.u32 %s2472_s14, 4  ;;  %s2538_s13 = scalar_lea.hbm %s2589_s5, %s1529_s16  ;;  %s2540_s10 = int_to_ptr.vmem [resolvable:$true] %s1335_s10 }
  0x61   : > { %1531 = vmatpush3.bf16.msra.mxu1 %v1812_v33  ;;  %v1766_v38 = vld [vmem:[%s2348_s15 + $0x14] ss:$8 sps:$4 sm:$0xff]   ;;  %v1768_v39 = vld [vmem:[%s2348_s15 + $0x10] ss:$8 sps:$4 sm:$0xff]   ;;  %v1769_v40 = vld [vmem:[%s2348_s15 + $0x24] ss:$8 sps:$4 sm:$0xff]  }
  0x62   : > { %679 = vmatpush1.bf16.msra.mxu0 %v1726_v7  ;;  %1532 = vmatprep.subr.bf16.mxu1 %v1813_v34  ;;  %v1771_v41 = vld [vmem:[%s2348_s15 + $0x20] ss:$8 sps:$4 sm:$0xff]   ;;  %v1772_v42 = vld [vmem:[%s2348_s15 + $0x34] ss:$8 sps:$4 sm:$0xff]   ;;  %v1774_v43 = vld [vmem:[%s2348_s15 + $0x30] ss:$8 sps:$4 sm:$0xff]  }
  0x63   : > { %680 = vmatprep.subr.bf16.mxu0 %v1727_v8  ;;  %v1775_v44 = vld [vmem:[%s2348_s15 + $0x44] ss:$8 sps:$4 sm:$0xff]   ;;  %v1777_v45 = vld [vmem:[%s2348_s15 + $0x40] ss:$8 sps:$4 sm:$0xff]   ;;  %v1778_v46 = vld [vmem:[%s2348_s15 + $0x54] ss:$8 sps:$4 sm:$0xff]  }
  0x64   : > { %v1780_v47 = vld [vmem:[%s2348_s15 + $0x50] ss:$8 sps:$4 sm:$0xff]   ;;  %v1781_v48 = vld [vmem:[%s2348_s15 + $0x64] ss:$8 sps:$4 sm:$0xff]   ;;  %v1783_v49 = vld [vmem:[%s2348_s15 + $0x60] ss:$8 sps:$4 sm:$0xff]  }
  0x65   : > { %1533 = vmatpush3.bf16.msra.mxu1 %v1814_v36  ;;  %v1784_v50 = vld [vmem:[%s2348_s15 + $0x74] ss:$8 sps:$4 sm:$0xff]   ;;  %v1786_v51 = vld [vmem:[%s2348_s15 + $0x70] ss:$8 sps:$4 sm:$0xff]   ;;  %v1787_v52 = vld [vmem:[%s2348_s15 + $0x84] ss:$8 sps:$4 sm:$0xff]  }
  0x66   : > { %681 = vmatpush1.bf16.msra.mxu0 %v1729_v9  ;;  %v1789_v53 = vld [vmem:[%s2348_s15 + $0x80] ss:$8 sps:$4 sm:$0xff]   ;;  %v1790_v54 = vld [vmem:[%s2348_s15 + $0x94] ss:$8 sps:$4 sm:$0xff]   ;;  %v1792_v57 = vld [vmem:[%s2348_s15 + $0x90] ss:$8 sps:$4 sm:$0xff]  }
  0x67   : > { %682 = vmatprep.subr.bf16.mxu0 %v1730_v10  ;;  %v1815_v55 = vld [vmem:[#allocation7 + $0x68] sm:$0xff]   ;;  %v1817_v58 = vld [vmem:[#allocation7 + $0x60] sm:$0xff]   ;;  %v1819_v61 = vld [vmem:[#allocation7 + $0x58] sm:$0xff]   ;;  %s1322_s27 = scalar_lea.sflag [#allocation4], %s2342_s6  ;;  %s2099_s23 = scalar_lea.vmem %s2540_s10, 4096 }
  0x68   : > { %v1816_v56 = vld [vmem:[#allocation7 + $0x28] sm:$0xff]   ;;  %1534 = vmatprep.subr.bf16.mxu1 %v1815_v55  ;;  %v1818_v60 = vld [vmem:[#allocation7 + $0x20] sm:$0xff]   ;;  %v1820_v62 = vld [vmem:[#allocation7 + $0x18] sm:$0xff]   ;;  %p2100_p10 = scmp.ne.s32.totalorder %s2540_s10, %s2099_s23  ;;  %p2606_p2 = scmp.ne.s32.totalorder %s2599_s30, 0 }
  0x69   : > { %1535 = vmatpush3.bf16.msra.mxu1 %v1816_v56  ;;  %v1793_v59 = vld [vmem:[%s2348_s15 + $0xa4] ss:$8 sps:$4 sm:$0xff]   ;;  %v1795_v63 = vld [vmem:[%s2348_s15 + $0xa0] ss:$8 sps:$4 sm:$0xff]   ;;  %v1821_v0 = vld [vmem:[#allocation7 + $0x50] sm:$0xff]   ;;  %s2176_s22 = smov [#allocation8]  }
  0x6a   : > { %683 = vmatpush1.bf16.msra.mxu0 %v1732_v11  ;;  %1536 = vmatprep.subr.bf16.mxu1 %v1817_v58  ;;  %v1796_v1 = vld [vmem:[%s2348_s15 + $0xb4] ss:$8 sps:$4 sm:$0xff]   ;;  %v1823_v3 = vld [vmem:[#allocation7 + $0x48] sm:$0xff]   ;;  %v1798_v5 = vld [vmem:[%s2348_s15 + $0xb0] ss:$8 sps:$4 sm:$0xff]   ;;  %p2101_p7 = pnand %p2100_p10, %p2606_p2  ;;  %s2103_s8 = sshll.u32 %s2176_s22, 4  ;;  %s2104_s8 = int_to_ptr.vmem [resolvable:$false] %s2103_s8 }
  0x6b   : > { %684 = vmatprep.subr.bf16.mxu0 %v1733_v12  ;;  %v1822_v2 = vld [vmem:[#allocation7 + $0x10] sm:$0xff]   ;;  %v1824_v4 = vld [vmem:[#allocation7 + $0x8] sm:$0xff]   ;;  %v1825_v6 = vld [vmem:[#allocation7 + $0x40] sm:$0xff]   ;;  %s2105_s7 = scalar_lea.vmem %s2104_s8, 8192  ;;  %p2106_p13 = scmp.lt.s32.totalorder %s2540_s10, %s2104_s8 }
  0x6c   : > { %v1799_v7 = vld [vmem:[%s2348_s15 + $0xc4] ss:$8 sps:$4 sm:$0xff]   ;;  %v1801_v9 = vld [vmem:[%s2348_s15 + $0xc0] ss:$8 sps:$4 sm:$0xff]   ;;  %v1802_v10 = vld [vmem:[%s2348_s15 + $0xd4] ss:$8 sps:$4 sm:$0xff]   ;;  %p2102_p12 = pneg %p2101_p7  ;;  %p2107_p0 = scmp.lt.s32.totalorder %s2105_s7, %s2099_s23 }
  0x6d   : > { %1537 = vmatpush3.bf16.msra.mxu1 %v1818_v60  ;;  %v1826_v8 = vld [vmem:[#allocation7] sm:$0xff]   ;;  %v1804_v11 = vld [vmem:[%s2348_s15 + $0xd0] ss:$8 sps:$4 sm:$0xff]  }
  0x6e   : > { %685 = vmatpush1.bf16.msra.mxu0 %v1735_v14  ;;  %1538 = vmatprep.subr.bf16.mxu1 %v1819_v61  ;;  %v1805_v12 = vld [vmem:[%s2348_s15 + $0xe4] ss:$8 sps:$4 sm:$0xff]   ;;  %v1807_v13 = vld [vmem:[%s2348_s15 + $0xe0] ss:$8 sps:$4 sm:$0xff]   ;;  %v1808_v14 = vld [vmem:[%s2348_s15 + $0xf4] ss:$8 sps:$4 sm:$0xff]   ;;  %p2108_p5 = por %p2107_p0, %p2106_p13 }
  0x6f   : > { %686 = vmatprep.subr.bf16.mxu0 %v1736_v15  ;;  %v1810_v15 = vld [vmem:[%s2348_s15 + $0xf0] ss:$8 sps:$4 sm:$0xff]  }
  0x70   : > { %p2109_p3 = pnand %p2108_p5, %p2102_p12 }
  0x71   : > { %1539 = vmatpush3.bf16.msra.mxu1 %v1820_v62 }
  0x72   : > { %687 = vmatpush1.bf16.msra.mxu0 %v1738_v16  ;;  %1540 = vmatprep.subr.bf16.mxu1 %v1821_v0  ;;  %v342_v16 = vlaneseq }
  0x73   : > { %688 = vmatprep.subr.bf16.mxu0 %v1739_v17 }
  0x74   : > { %v343_v17 = vshrl.u32 %v342_v16, 7 }
  0x75   : > { %1541 = vmatpush3.bf16.msra.mxu1 %v1822_v2 }
  0x76   : > { %689 = vmatpush2.bf16.msra.mxu0 %v1741_v18  ;;  %1542 = vmatprep.subr.bf16.mxu1 %v1823_v3  ;;  %v348_v18 = vsub.s32 1, %v343_v17 }
  0x77   : > { %690 = vmatprep.subr.bf16.mxu0 %v1742_v19  ;;  %v340_v19 = vld [vmem:[%s2586_s2] sm:$0x3] }
  0x79   : > { %1543 = vmatpush3.bf16.msra.mxu1 %v1824_v4 }
  0x7a   : > { %691 = vmatpush2.bf16.msra.mxu0 %v1744_v20  ;;  %1544 = vmatprep.subr.bf16.mxu1 %v1825_v6  ;;  %v344_v20 = vsub.s32 0, %v343_v17 }
  0x7b   : > { %692 = vmatprep.subr.bf16.mxu0 %v1745_v21  ;;  %v2393_v21 = vrot.slane %v340_v19, %v348_v18 }
  0x7d   : > { %1545 = vmatpush3.bf16.msra.mxu1 %v1826_v8 }
  0x7e   : > { %693 = vmatpush2.bf16.msra.mxu0 %v1747_v22 }
  0x7f   : > { %694 = vmatprep.subr.bf16.mxu0 %v1748_v23  ;;  %v2395_v23 = vrot.slane %v340_v19, %v344_v20 }
  0x82   : > { %695 = vmatpush2.bf16.msra.mxu0 %v1750_v24 }
  0x83   : > { %696 = vmatprep.subr.bf16.mxu0 %v1751_v25 }
  0x86   : > { %697 = vmatpush2.bf16.msra.mxu0 %v1753_v26 }
  0x87   : > { %698 = vmatprep.subr.bf16.mxu0 %v1754_v27 }
  0x8a   : > { %699 = vmatpush2.bf16.msra.mxu0 %v1756_v28 }
  0x8b   : > { %700 = vmatprep.subr.bf16.mxu0 %v1757_v29 }
  0x8e   : > { %701 = vmatpush2.bf16.msra.mxu0 %v1759_v30 }
  0x8f   : > { %702 = vmatprep.subr.bf16.mxu0 %v1760_v31 }
  0x92   : > { %703 = vmatpush2.bf16.msra.mxu0 %v1762_v35 }
  0x95   : > { %705 = vmatmul.mubr.bf16.vlgmr.msra.gmra.mxu0 %v1763_v37 }
  0x96   : > { %714 = vmatprep.mubr.bf16.mxu0 %v1766_v38 }
  0x9d   : > { %715 = vmatmul.mubr.bf16.gmra.mxu0 %v1768_v39 }
  0x9e   : > { %724 = vmatprep.mubr.bf16.mxu0 %v1769_v40 }
  0xa5   : > { %725 = vmatmul.mubr.bf16.gmra.mxu0 %v1771_v41 }
  0xa6   : > { %734 = vmatprep.mubr.bf16.mxu0 %v1772_v42 }
  0xad   : > { %735 = vmatmul.mubr.bf16.gmra.mxu0 %v1774_v43 }
  0xae   : > { %744 = vmatprep.mubr.bf16.mxu0 %v1775_v44 }
  0xb5   : > { %745 = vmatmul.mubr.bf16.gmra.mxu0 %v1777_v45 }
  0xb6   : > { %754 = vmatprep.mubr.bf16.mxu0 %v1778_v46 }
  0xbd   : > { %755 = vmatmul.mubr.bf16.gmra.mxu0 %v1780_v47 }
  0xbe   : > { %764 = vmatprep.mubr.bf16.mxu0 %v1781_v48 }
  0xc5   : > { %765 = vmatmul.mubr.bf16.gmra.mxu0 %v1783_v49 }
  0xc6   : > { %774 = vmatprep.mubr.bf16.mxu0 %v1784_v50 }
  0xcd   : > { %775 = vmatmul.mubr.bf16.gmra.mxu0 %v1786_v51 }
  0xce   : > { %784 = vmatprep.mubr.bf16.mxu0 %v1787_v52 }
  0xd5   : > { %785 = vmatmul.mubr.bf16.gmra.mxu0 %v1789_v53 }
  0xd6   : > { %794 = vmatprep.mubr.bf16.mxu0 %v1790_v54 }
  0xdd   : > { %795 = vmatmul.mubr.bf16.gmra.mxu0 %v1792_v57 }
  0xde   : > { %804 = vmatprep.mubr.bf16.mxu0 %v1793_v59 }
  0xe5   : > { %805 = vmatmul.mubr.bf16.gmra.mxu0 %v1795_v63 }
  0xe6   : > { %814 = vmatprep.mubr.bf16.mxu0 %v1796_v1 }
  0xed   : > { %815 = vmatmul.mubr.bf16.gmra.mxu0 %v1798_v5 }
  0xee   : > { %824 = vmatprep.mubr.bf16.mxu0 %v1799_v7 }
  0xf5   : > { %825 = vmatmul.mubr.bf16.gmra.mxu0 %v1801_v9 }
  0xf6   : > { %834 = vmatprep.mubr.bf16.mxu0 %v1802_v10 }
  0xfd   : > { %835 = vmatmul.mubr.bf16.gmra.mxu0 %v1804_v11 }
  0xfe   : > { %844 = vmatprep.mubr.bf16.mxu0 %v1805_v12 }
 0x105   : > { %845 = vmatmul.mubr.bf16.gmra.mxu0 %v1807_v13 }
 0x106   : > { %854 = vmatprep.mubr.bf16.mxu0 %v1808_v14 }
 0x10d   : > { %855 = vmatmul.mubr.bf16.gmra.mxu0 %v1810_v15 }
 0x155   : > { %v706_v22 = vpop.f32.mrf.mxu0 }
 0x156   : > { %v707_v28 = vadd.f32 %v706_v22, %v2395_v23 }
 0x157   : > { %v708_v24 = vpop.f32.mrf.mxu0 }
 0x158   : > { %v709_v25 = vadd.f32 %v708_v24, %v2393_v21 }
 0x159   : > { %v710_v26 = vpop.f32.mrf.mxu0 }
 0x15a   : > { %v711_v27 = vadd.f32 %v710_v26, %v2395_v23  ;;  %1827 = vtanh.f32 %v709_v25 }
 0x15b   : > { %v712_v29 = vpop.f32.mrf.mxu0 }
 0x15c   : > { %v713_v30 = vadd.f32 %v712_v29, %v2393_v21  ;;  %1829 = vtanh.f32 %v711_v27 }
 0x15d   : > { %v716_v31 = vpop.f32.mrf.mxu0 }
 0x15e   : > { %1831 = vtanh.f32 %v713_v30  ;;  %v717_v36 = vadd.f32 %v716_v31, %v2395_v23 }
 0x15f   : > { %1833 = vtanh.f32 %v707_v28  ;;  %v718_v32 = vpop.f32.mrf.mxu0 }
 0x160   : > { %v719_v33 = vadd.f32 %v718_v32, %v2393_v21 }
 0x161   : > { %v720_v34 = vpop.f32.mrf.mxu0 }
 0x162   : > { %v721_v35 = vadd.f32 %v720_v34, %v2395_v23  ;;  %1835 = vtanh.f32 %v719_v33 }
 0x163   : > { %v722_v37 = vpop.f32.mrf.mxu0 }
 0x164   : > { %v723_v38 = vadd.f32 %v722_v37, %v2393_v21  ;;  %1837 = vtanh.f32 %v721_v35 }
 0x165   : > { %v726_v39 = vpop.f32.mrf.mxu0 }
 0x166   : > { %1839 = vtanh.f32 %v723_v38  ;;  %v727_v47 = vadd.f32 %v726_v39, %v2395_v23 }
 0x167   : > { %1841 = vtanh.f32 %v717_v36  ;;  %v728_v40 = vpop.f32.mrf.mxu0  ;;  %v1828_v42 = vpop.eup %1827 }
 0x168   : > { %v729_v41 = vadd.f32 %v728_v40, %v2393_v21 }
 0x169   : > { %v730_v43 = vpop.f32.mrf.mxu0  ;;  %v1830_v44 = vpop.eup %1829 }
 0x16a   : > { %v731_v45 = vadd.f32 %v730_v43, %v2395_v23  ;;  %1843 = vtanh.f32 %v729_v41 }
 0x16b   : > { %v1832_v46 = vpop.eup %1831  ;;  %v732_v48 = vpop.f32.mrf.mxu0 }
 0x16c   : > { %v1834_v49 = vpop.eup %1833  ;;  %v733_v50 = vadd.f32 %v732_v48, %v2393_v21  ;;  %v963_v51 = vpack.c.bf16 %v1832_v46, %v1828_v42  ;;  %1845 = vtanh.f32 %v731_v45 }
 0x16d   : > { %v736_v52 = vpop.f32.mrf.mxu0  ;;  %v962_v53 = vpack.c.bf16 %v1830_v44, %v1834_v49 }
 0x16e   : > { %1847 = vtanh.f32 %v733_v50  ;;  %1128 = vmatprep.mubr.bf16.mxu1 %v963_v51  ;;  %v737_v61 = vadd.f32 %v736_v52, %v2395_v23 }
 0x16f   : > { %1849 = vtanh.f32 %v727_v47  ;;  %v738_v54 = vpop.f32.mrf.mxu0  ;;  %1129 = vmatmul.mubr.bf16.vlgmr.msra.gmra.mxu1 %v962_v53  ;;  %v1836_v56 = vpop.eup %1835 }
 0x170   : > { %v739_v55 = vadd.f32 %v738_v54, %v2393_v21 }
 0x171   : > { %v740_v57 = vpop.f32.mrf.mxu0  ;;  %v1838_v58 = vpop.eup %1837 }
 0x172   : > { %v741_v59 = vadd.f32 %v740_v57, %v2395_v23  ;;  %1851 = vtanh.f32 %v739_v55 }
 0x173   : > { %v1840_v60 = vpop.eup %1839  ;;  %v742_v62 = vpop.f32.mrf.mxu0 }
 0x174   : > { %v1842_v63 = vpop.eup %1841  ;;  %v743_v0 = vadd.f32 %v742_v62, %v2393_v21  ;;  %v965_v1 = vpack.c.bf16 %v1840_v60, %v1836_v56  ;;  %1853 = vtanh.f32 %v741_v59 }
 0x175   : > { %v746_v2 = vpop.f32.mrf.mxu0  ;;  %v964_v3 = vpack.c.bf16 %v1838_v58, %v1842_v63 }
 0x176   : > { %1855 = vtanh.f32 %v743_v0  ;;  %1136 = vmatprep.mubr.bf16.mxu1 %v965_v1  ;;  %v747_v11 = vadd.f32 %v746_v2, %v2395_v23 }
 0x177   : > { %1857 = vtanh.f32 %v737_v61  ;;  %v748_v4 = vpop.f32.mrf.mxu0  ;;  %1137 = vmatmul.mubr.bf16.gmra.mxu1 %v964_v3  ;;  %v1844_v6 = vpop.eup %1843 }
 0x178   : > { %v749_v5 = vadd.f32 %v748_v4, %v2393_v21 }
 0x179   : > { %v750_v7 = vpop.f32.mrf.mxu0  ;;  %v1846_v8 = vpop.eup %1845 }
 0x17a   : > { %v751_v9 = vadd.f32 %v750_v7, %v2395_v23  ;;  %1859 = vtanh.f32 %v749_v5 }
 0x17b   : > { %v1848_v10 = vpop.eup %1847  ;;  %v752_v12 = vpop.f32.mrf.mxu0 }
 0x17c   : > { %v1850_v13 = vpop.eup %1849  ;;  %v753_v14 = vadd.f32 %v752_v12, %v2393_v21  ;;  %v967_v15 = vpack.c.bf16 %v1848_v10, %v1844_v6  ;;  %1861 = vtanh.f32 %v751_v9 }
 0x17d   : > { %v756_v16 = vpop.f32.mrf.mxu0  ;;  %v966_v17 = vpack.c.bf16 %v1846_v8, %v1850_v13 }
 0x17e   : > { %1863 = vtanh.f32 %v753_v14  ;;  %1144 = vmatprep.mubr.bf16.mxu1 %v967_v15  ;;  %v757_v27 = vadd.f32 %v756_v16, %v2395_v23 }
 0x17f   : > { %1865 = vtanh.f32 %v747_v11  ;;  %v758_v18 = vpop.f32.mrf.mxu0  ;;  %1145 = vmatmul.mubr.bf16.gmra.mxu1 %v966_v17  ;;  %v1852_v20 = vpop.eup %1851 }
 0x180   : > { %v759_v19 = vadd.f32 %v758_v18, %v2393_v21 }
 0x181   : > { %v760_v22 = vpop.f32.mrf.mxu0  ;;  %v1854_v24 = vpop.eup %1853 }
 0x182   : > { %v761_v25 = vadd.f32 %v760_v22, %v2395_v23  ;;  %1867 = vtanh.f32 %v759_v19 }
 0x183   : > { %v1856_v26 = vpop.eup %1855  ;;  %v762_v28 = vpop.f32.mrf.mxu0 }
 0x184   : > { %v1858_v29 = vpop.eup %1857  ;;  %v763_v30 = vadd.f32 %v762_v28, %v2393_v21  ;;  %v969_v31 = vpack.c.bf16 %v1856_v26, %v1852_v20  ;;  %1869 = vtanh.f32 %v761_v25 }
 0x185   : > { %v766_v32 = vpop.f32.mrf.mxu0  ;;  %v968_v33 = vpack.c.bf16 %v1854_v24, %v1858_v29 }
 0x186   : > { %1871 = vtanh.f32 %v763_v30  ;;  %1152 = vmatprep.mubr.bf16.mxu1 %v969_v31  ;;  %v767_v41 = vadd.f32 %v766_v32, %v2395_v23 }
 0x187   : > { %1873 = vtanh.f32 %v757_v27  ;;  %v768_v34 = vpop.f32.mrf.mxu0  ;;  %1153 = vmatmul.mubr.bf16.gmra.mxu1 %v968_v33  ;;  %v1860_v36 = vpop.eup %1859 }
 0x188   : > { %v769_v35 = vadd.f32 %v768_v34, %v2393_v21 }
 0x189   : > { %v770_v37 = vpop.f32.mrf.mxu0  ;;  %v1862_v38 = vpop.eup %1861 }
 0x18a   : > { %v771_v39 = vadd.f32 %v770_v37, %v2395_v23  ;;  %1875 = vtanh.f32 %v769_v35 }
 0x18b   : > { %v1864_v40 = vpop.eup %1863  ;;  %v772_v42 = vpop.f32.mrf.mxu0 }
 0x18c   : > { %v1866_v43 = vpop.eup %1865  ;;  %v773_v44 = vadd.f32 %v772_v42, %v2393_v21  ;;  %v971_v45 = vpack.c.bf16 %v1864_v40, %v1860_v36  ;;  %1877 = vtanh.f32 %v771_v39 }
 0x18d   : > { %v776_v46 = vpop.f32.mrf.mxu0  ;;  %v970_v47 = vpack.c.bf16 %v1862_v38, %v1866_v43 }
 0x18e   : > { %1879 = vtanh.f32 %v773_v44  ;;  %1160 = vmatprep.mubr.bf16.mxu1 %v971_v45  ;;  %v777_v55 = vadd.f32 %v776_v46, %v2395_v23 }
 0x18f   : > { %1881 = vtanh.f32 %v767_v41  ;;  %v778_v48 = vpop.f32.mrf.mxu0  ;;  %1161 = vmatmul.mubr.bf16.gmra.mxu1 %v970_v47  ;;  %v1868_v50 = vpop.eup %1867 }
 0x190   : > { %v779_v49 = vadd.f32 %v778_v48, %v2393_v21 }
 0x191   : > { %v780_v51 = vpop.f32.mrf.mxu0  ;;  %v1870_v52 = vpop.eup %1869 }
 0x192   : > { %v781_v53 = vadd.f32 %v780_v51, %v2395_v23  ;;  %1883 = vtanh.f32 %v779_v49 }
 0x193   : > { %v1872_v54 = vpop.eup %1871  ;;  %v782_v56 = vpop.f32.mrf.mxu0 }
 0x194   : > { %v1874_v57 = vpop.eup %1873  ;;  %v783_v58 = vadd.f32 %v782_v56, %v2393_v21  ;;  %v973_v59 = vpack.c.bf16 %v1872_v54, %v1868_v50  ;;  %1885 = vtanh.f32 %v781_v53 }
 0x195   : > { %v786_v60 = vpop.f32.mrf.mxu0  ;;  %v972_v61 = vpack.c.bf16 %v1870_v52, %v1874_v57 }
 0x196   : > { %1887 = vtanh.f32 %v783_v58  ;;  %1168 = vmatprep.mubr.bf16.mxu1 %v973_v59  ;;  %v787_v5 = vadd.f32 %v786_v60, %v2395_v23 }
 0x197   : > { %1889 = vtanh.f32 %v777_v55  ;;  %v788_v62 = vpop.f32.mrf.mxu0  ;;  %1169 = vmatmul.mubr.bf16.gmra.mxu1 %v972_v61  ;;  %v1876_v0 = vpop.eup %1875 }
 0x198   : > { %v789_v63 = vadd.f32 %v788_v62, %v2393_v21 }
 0x199   : > { %v790_v1 = vpop.f32.mrf.mxu0  ;;  %v1878_v2 = vpop.eup %1877 }
 0x19a   : > { %v791_v3 = vadd.f32 %v790_v1, %v2395_v23  ;;  %1891 = vtanh.f32 %v789_v63 }
 0x19b   : > { %v1880_v4 = vpop.eup %1879  ;;  %v792_v6 = vpop.f32.mrf.mxu0 }
 0x19c   : > { %v1882_v7 = vpop.eup %1881  ;;  %v793_v8 = vadd.f32 %v792_v6, %v2393_v21  ;;  %v975_v9 = vpack.c.bf16 %v1880_v4, %v1876_v0  ;;  %1893 = vtanh.f32 %v791_v3 }
 0x19d   : > { %v796_v10 = vpop.f32.mrf.mxu0  ;;  %v974_v11 = vpack.c.bf16 %v1878_v2, %v1882_v7 }
 0x19e   : > { %1895 = vtanh.f32 %v793_v8  ;;  %1176 = vmatprep.mubr.bf16.mxu1 %v975_v9  ;;  %v797_v19 = vadd.f32 %v796_v10, %v2395_v23 }
 0x19f   : > { %1897 = vtanh.f32 %v787_v5  ;;  %v798_v12 = vpop.f32.mrf.mxu0  ;;  %1177 = vmatmul.mubr.bf16.gmra.mxu1 %v974_v11  ;;  %v1884_v14 = vpop.eup %1883 }
 0x1a0   : > { %v799_v13 = vadd.f32 %v798_v12, %v2393_v21 }
 0x1a1   : > { %v800_v15 = vpop.f32.mrf.mxu0  ;;  %v1886_v16 = vpop.eup %1885 }
 0x1a2   : > { %v801_v17 = vadd.f32 %v800_v15, %v2395_v23  ;;  %1899 = vtanh.f32 %v799_v13 }
 0x1a3   : > { %v1888_v18 = vpop.eup %1887  ;;  %v802_v20 = vpop.f32.mrf.mxu0 }
 0x1a4   : > { %v1890_v22 = vpop.eup %1889  ;;  %v803_v24 = vadd.f32 %v802_v20, %v2393_v21  ;;  %v977_v25 = vpack.c.bf16 %v1888_v18, %v1884_v14  ;;  %1901 = vtanh.f32 %v801_v17 }
 0x1a5   : > { %v806_v26 = vpop.f32.mrf.mxu0  ;;  %v976_v27 = vpack.c.bf16 %v1886_v16, %v1890_v22 }
 0x1a6   : > { %1903 = vtanh.f32 %v803_v24  ;;  %1184 = vmatprep.mubr.bf16.mxu1 %v977_v25  ;;  %v807_v35 = vadd.f32 %v806_v26, %v2395_v23 }
 0x1a7   : > { %1905 = vtanh.f32 %v797_v19  ;;  %v808_v28 = vpop.f32.mrf.mxu0  ;;  %1185 = vmatmul.mubr.bf16.gmra.mxu1 %v976_v27  ;;  %v1892_v30 = vpop.eup %1891 }
 0x1a8   : > { %v809_v29 = vadd.f32 %v808_v28, %v2393_v21 }
 0x1a9   : > { %v810_v31 = vpop.f32.mrf.mxu0  ;;  %v1894_v32 = vpop.eup %1893 }
 0x1aa   : > { %v811_v33 = vadd.f32 %v810_v31, %v2395_v23  ;;  %1907 = vtanh.f32 %v809_v29 }
 0x1ab   : > { %v1896_v34 = vpop.eup %1895  ;;  %v812_v36 = vpop.f32.mrf.mxu0 }
 0x1ac   : > { %v1898_v37 = vpop.eup %1897  ;;  %v813_v38 = vadd.f32 %v812_v36, %v2393_v21  ;;  %v979_v39 = vpack.c.bf16 %v1896_v34, %v1892_v30  ;;  %1909 = vtanh.f32 %v811_v33 }
 0x1ad   : > { %v816_v40 = vpop.f32.mrf.mxu0  ;;  %v978_v41 = vpack.c.bf16 %v1894_v32, %v1898_v37 }
 0x1ae   : > { %1911 = vtanh.f32 %v813_v38  ;;  %1192 = vmatprep.mubr.bf16.mxu1 %v979_v39  ;;  %v817_v49 = vadd.f32 %v816_v40, %v2395_v23 }
 0x1af   : > { %1913 = vtanh.f32 %v807_v35  ;;  %v818_v42 = vpop.f32.mrf.mxu0  ;;  %1193 = vmatmul.mubr.bf16.gmra.mxu1 %v978_v41  ;;  %v1900_v44 = vpop.eup %1899 }
 0x1b0   : > { %v819_v43 = vadd.f32 %v818_v42, %v2393_v21 }
 0x1b1   : > { %v820_v45 = vpop.f32.mrf.mxu0  ;;  %v1902_v46 = vpop.eup %1901 }
 0x1b2   : > { %v821_v47 = vadd.f32 %v820_v45, %v2395_v23  ;;  %1915 = vtanh.f32 %v819_v43 }
 0x1b3   : > { %v1904_v48 = vpop.eup %1903  ;;  %v822_v50 = vpop.f32.mrf.mxu0 }
 0x1b4   : > { %v1906_v51 = vpop.eup %1905  ;;  %v823_v52 = vadd.f32 %v822_v50, %v2393_v21  ;;  %v981_v53 = vpack.c.bf16 %v1904_v48, %v1900_v44  ;;  %1917 = vtanh.f32 %v821_v47 }
 0x1b5   : > { %v826_v54 = vpop.f32.mrf.mxu0  ;;  %v980_v55 = vpack.c.bf16 %v1902_v46, %v1906_v51 }
 0x1b6   : > { %1919 = vtanh.f32 %v823_v52  ;;  %1200 = vmatprep.mubr.bf16.mxu1 %v981_v53  ;;  %v827_v63 = vadd.f32 %v826_v54, %v2395_v23 }
 0x1b7   : > { %1921 = vtanh.f32 %v817_v49  ;;  %v828_v56 = vpop.f32.mrf.mxu0  ;;  %1201 = vmatmul.mubr.bf16.gmra.mxu1 %v980_v55  ;;  %v1908_v58 = vpop.eup %1907 }
 0x1b8   : > { %v829_v57 = vadd.f32 %v828_v56, %v2393_v21 }
 0x1b9   : > { %v830_v59 = vpop.f32.mrf.mxu0  ;;  %v1910_v60 = vpop.eup %1909 }
 0x1ba   : > { %v831_v61 = vadd.f32 %v830_v59, %v2395_v23  ;;  %1923 = vtanh.f32 %v829_v57 }
 0x1bb   : > { %v1912_v62 = vpop.eup %1911  ;;  %v832_v0 = vpop.f32.mrf.mxu0 }
 0x1bc   : > { %v1914_v1 = vpop.eup %1913  ;;  %v833_v2 = vadd.f32 %v832_v0, %v2393_v21  ;;  %v983_v3 = vpack.c.bf16 %v1912_v62, %v1908_v58  ;;  %1925 = vtanh.f32 %v831_v61 }
 0x1bd   : > { %v836_v4 = vpop.f32.mrf.mxu0  ;;  %v982_v5 = vpack.c.bf16 %v1910_v60, %v1914_v1  ;;  %v2464_v60 = vld [vmem:[%s2588_s4] ss:$0 sm:$0xff] }
 0x1be   : > { %1927 = vtanh.f32 %v833_v2  ;;  %1208 = vmatprep.mubr.bf16.mxu1 %v983_v3  ;;  %v837_v13 = vadd.f32 %v836_v4, %v2395_v23 }
 0x1bf   : > { %1929 = vtanh.f32 %v827_v63  ;;  %v838_v6 = vpop.f32.mrf.mxu0  ;;  %1209 = vmatmul.mubr.bf16.gmra.mxu1 %v982_v5  ;;  %v1916_v8 = vpop.eup %1915 }
 0x1c0   : > { %v839_v7 = vadd.f32 %v838_v6, %v2393_v21 }
 0x1c1   : > { %v840_v9 = vpop.f32.mrf.mxu0  ;;  %v1918_v10 = vpop.eup %1917 }
 0x1c2   : > { %v841_v11 = vadd.f32 %v840_v9, %v2395_v23  ;;  %1931 = vtanh.f32 %v839_v7 }
 0x1c3   : > { %v1920_v12 = vpop.eup %1919  ;;  %v842_v14 = vpop.f32.mrf.mxu0 }
 0x1c4   : > { %v1922_v15 = vpop.eup %1921  ;;  %v843_v16 = vadd.f32 %v842_v14, %v2393_v21  ;;  %v985_v17 = vpack.c.bf16 %v1920_v12, %v1916_v8  ;;  %1933 = vtanh.f32 %v841_v11 }
 0x1c5   : > { %v846_v18 = vpop.f32.mrf.mxu0  ;;  %v984_v19 = vpack.c.bf16 %v1918_v10, %v1922_v15 }
 0x1c6   : > { %1935 = vtanh.f32 %v843_v16  ;;  %1216 = vmatprep.mubr.bf16.mxu1 %v985_v17  ;;  %v847_v29 = vadd.f32 %v846_v18, %v2395_v23 }
 0x1c7   : > { %1937 = vtanh.f32 %v837_v13  ;;  %v848_v20 = vpop.f32.mrf.mxu0  ;;  %1217 = vmatmul.mubr.bf16.gmra.mxu1 %v984_v19  ;;  %v1924_v24 = vpop.eup %1923 }
 0x1c8   : > { %v849_v22 = vadd.f32 %v848_v20, %v2393_v21 }
 0x1c9   : > { %v850_v25 = vpop.f32.mrf.mxu0  ;;  %v1926_v26 = vpop.eup %1925 }
 0x1ca   : > { %v851_v27 = vadd.f32 %v850_v25, %v2395_v23  ;;  %1939 = vtanh.f32 %v849_v22 }
 0x1cb   : > { %v1928_v28 = vpop.eup %1927  ;;  %v852_v30 = vpop.f32.mrf.mxu0 }
 0x1cc   : > { %v1930_v31 = vpop.eup %1929  ;;  %v853_v32 = vadd.f32 %v852_v30, %v2393_v21  ;;  %v987_v33 = vpack.c.bf16 %v1928_v28, %v1924_v24  ;;  %1941 = vtanh.f32 %v851_v27 }
 0x1cd   : > { %v856_v34 = vpop.f32.mrf.mxu0  ;;  %v986_v35 = vpack.c.bf16 %v1926_v26, %v1930_v31 }
 0x1ce   : > { %1943 = vtanh.f32 %v853_v32  ;;  %1224 = vmatprep.mubr.bf16.mxu1 %v987_v33  ;;  %v857_v43 = vadd.f32 %v856_v34, %v2395_v23 }
 0x1cf   : > { %1945 = vtanh.f32 %v847_v29  ;;  %v858_v36 = vpop.f32.mrf.mxu0  ;;  %1225 = vmatmul.mubr.bf16.gmra.mxu1 %v986_v35  ;;  %v1932_v38 = vpop.eup %1931 }
 0x1d0   : > { %v859_v37 = vadd.f32 %v858_v36, %v2393_v21 }
 0x1d1   : > { %v860_v39 = vpop.f32.mrf.mxu0  ;;  %v1934_v40 = vpop.eup %1933 }
 0x1d2   : > { %v861_v41 = vadd.f32 %v860_v39, %v2395_v23  ;;  %1947 = vtanh.f32 %v859_v37 }
 0x1d3   : > { %v1936_v42 = vpop.eup %1935  ;;  %v862_v44 = vpop.f32.mrf.mxu0 }
 0x1d4   : > { %v1938_v45 = vpop.eup %1937  ;;  %v863_v46 = vadd.f32 %v862_v44, %v2393_v21  ;;  %v989_v47 = vpack.c.bf16 %v1936_v42, %v1932_v38  ;;  %1949 = vtanh.f32 %v861_v41 }
 0x1d5   : > { %v988_v48 = vpack.c.bf16 %v1934_v40, %v1938_v45 }
 0x1d6   : > { %1951 = vtanh.f32 %v863_v46  ;;  %1232 = vmatprep.mubr.bf16.mxu1 %v989_v47 }
 0x1d7   : > { %1953 = vtanh.f32 %v857_v43  ;;  %1233 = vmatmul.mubr.bf16.gmra.mxu1 %v988_v48  ;;  %v1940_v49 = vpop.eup %1939 }
 0x1d9   : > { %v1942_v50 = vpop.eup %1941 }
 0x1db   : > { %v1944_v51 = vpop.eup %1943 }
 0x1dc   : > { %v1946_v52 = vpop.eup %1945  ;;  %v991_v53 = vpack.c.bf16 %v1944_v51, %v1940_v49 }
 0x1dd   : > { %v990_v54 = vpack.c.bf16 %v1942_v50, %v1946_v52 }
 0x1de   : > { %1240 = vmatprep.mubr.bf16.mxu1 %v991_v53 }
 0x1df   : > { %1241 = vmatmul.mubr.bf16.gmra.mxu1 %v990_v54  ;;  %v1948_v23 = vpop.eup %1947 }
 0x1e1   : > { %v1950_v55 = vpop.eup %1949 }
 0x1e3   : > { %v1952_v56 = vpop.eup %1951 }
 0x1e4   : > { %v1954_v57 = vpop.eup %1953  ;;  %v993_v21 = vpack.c.bf16 %v1952_v56, %v1948_v23 }
 0x1e5   : > { %v992_v58 = vpack.c.bf16 %v1950_v55, %v1954_v57 }
 0x1e6   : > { %1248 = vmatprep.mubr.bf16.mxu1 %v993_v21 }
 0x1e7   : > { %1249 = vmatmul.mubr.bf16.gmra.mxu1 %v992_v58 }
 0x22f   : > { %v1546_v59 = vpop.f32.mrf.mxu1 }
 0x231   : > { %v1547_v61 = vpop.f32.mrf.mxu1 }
 0x232   : > { %v1548_v62 = vadd.f32 %v1547_v61, %v1546_v59 }
 0x233   : > { %v1549_v63 = vpop.f32.mrf.mxu1 }
 0x234   : > { %v1131_v0 = vadd.f32 %v1548_v62, %v2464_v60 }
 0x235   : > { %v1550_v1 = vpop.f32.mrf.mxu1 }
 0x236   : > { %1955 = vtanh.f32 %v1131_v0  ;;  %v1551_v2 = vadd.f32 %v1550_v1, %v1549_v63 }
 0x237   : > { %v1552_v3 = vpop.f32.mrf.mxu1 }
 0x238   : > { %v1134_v4 = vadd.f32 %v1551_v2, %v2464_v60 }
 0x239   : > { %v1553_v5 = vpop.f32.mrf.mxu1 }
 0x23a   : > { %1957 = vtanh.f32 %v1134_v4  ;;  %v1554_v6 = vadd.f32 %v1553_v5, %v1552_v3 }
 0x23b   : > { %v1555_v7 = vpop.f32.mrf.mxu1 }
 0x23c   : > { %v1139_v8 = vadd.f32 %v1554_v6, %v2464_v60 }
 0x23d   : > { %v1556_v9 = vpop.f32.mrf.mxu1 }
 0x23e   : > { %1959 = vtanh.f32 %v1139_v8  ;;  %v1557_v10 = vadd.f32 %v1556_v9, %v1555_v7 }
 0x23f   : > { %v1558_v11 = vpop.f32.mrf.mxu1 }
 0x240   : > { %v1142_v12 = vadd.f32 %v1557_v10, %v2464_v60 }
 0x241   : > { %v1559_v13 = vpop.f32.mrf.mxu1 }
 0x242   : > { %1961 = vtanh.f32 %v1142_v12  ;;  %v1560_v14 = vadd.f32 %v1559_v13, %v1558_v11 }
 0x243   : > { %v1956_v15 = vpop.eup %1955  ;;  %v1561_v16 = vpop.f32.mrf.mxu1 }
 0x244   : > { %1289 = vst [vmem:[%s2472_s14] sm:$0xff] %v1956_v15  ;;  %v1147_v17 = vadd.f32 %v1560_v14, %v2464_v60 }
 0x245   : > { %v1562_v18 = vpop.f32.mrf.mxu1 }
 0x246   : > { %1963 = vtanh.f32 %v1147_v17  ;;  %v1563_v19 = vadd.f32 %v1562_v18, %v1561_v16 }
 0x247   : > { %v1958_v20 = vpop.eup %1957  ;;  %v1564_v22 = vpop.f32.mrf.mxu1 }
 0x248   : > { %1290 = vst [vmem:[%s2472_s14 + $0x8] sm:$0xff] %v1958_v20  ;;  %v1150_v24 = vadd.f32 %v1563_v19, %v2464_v60 }
 0x249   : > { %v1565_v25 = vpop.f32.mrf.mxu1 }
 0x24a   : > { %1965 = vtanh.f32 %v1150_v24  ;;  %v1566_v26 = vadd.f32 %v1565_v25, %v1564_v22 }
 0x24b   : > { %v1960_v27 = vpop.eup %1959  ;;  %v1567_v28 = vpop.f32.mrf.mxu1 }
 0x24c   : > { %1291 = vst [vmem:[%s2472_s14 + $0x10] sm:$0xff] %v1960_v27  ;;  %v1155_v29 = vadd.f32 %v1566_v26, %v2464_v60 }
 0x24d   : > { %v1568_v30 = vpop.f32.mrf.mxu1 }
 0x24e   : > { %1967 = vtanh.f32 %v1155_v29  ;;  %v1569_v31 = vadd.f32 %v1568_v30, %v1567_v28 }
 0x24f   : > { %v1962_v32 = vpop.eup %1961  ;;  %v1570_v33 = vpop.f32.mrf.mxu1 }
 0x250   : > { %1292 = vst [vmem:[%s2472_s14 + $0x18] sm:$0xff] %v1962_v32  ;;  %v1158_v34 = vadd.f32 %v1569_v31, %v2464_v60 }
 0x251   : > { %v1571_v35 = vpop.f32.mrf.mxu1 }
 0x252   : > { %1969 = vtanh.f32 %v1158_v34  ;;  %v1572_v36 = vadd.f32 %v1571_v35, %v1570_v33 }
 0x253   : > { %v1964_v37 = vpop.eup %1963  ;;  %v1573_v38 = vpop.f32.mrf.mxu1 }
 0x254   : > { %1293 = vst [vmem:[%s2472_s14 + $0x20] sm:$0xff] %v1964_v37  ;;  %v1163_v39 = vadd.f32 %v1572_v36, %v2464_v60 }
 0x255   : > { %v1574_v40 = vpop.f32.mrf.mxu1 }
 0x256   : > { %1971 = vtanh.f32 %v1163_v39  ;;  %v1575_v41 = vadd.f32 %v1574_v40, %v1573_v38 }
 0x257   : > { %v1966_v42 = vpop.eup %1965  ;;  %v1576_v43 = vpop.f32.mrf.mxu1 }
 0x258   : > { %1294 = vst [vmem:[%s2472_s14 + $0x28] sm:$0xff] %v1966_v42  ;;  %v1166_v44 = vadd.f32 %v1575_v41, %v2464_v60 }
 0x259   : > { %v1577_v45 = vpop.f32.mrf.mxu1 }
 0x25a   : > { %1973 = vtanh.f32 %v1166_v44  ;;  %v1578_v46 = vadd.f32 %v1577_v45, %v1576_v43 }
 0x25b   : > { %v1968_v47 = vpop.eup %1967  ;;  %v1579_v48 = vpop.f32.mrf.mxu1 }
 0x25c   : > { %1295 = vst [vmem:[%s2472_s14 + $0x30] sm:$0xff] %v1968_v47  ;;  %v1171_v49 = vadd.f32 %v1578_v46, %v2464_v60 }
 0x25d   : > { %v1580_v50 = vpop.f32.mrf.mxu1 }
 0x25e   : > { %1975 = vtanh.f32 %v1171_v49  ;;  %v1581_v51 = vadd.f32 %v1580_v50, %v1579_v48 }
 0x25f   : > { %v1970_v52 = vpop.eup %1969  ;;  %v1582_v53 = vpop.f32.mrf.mxu1 }
 0x260   : > { %1296 = vst [vmem:[%s2472_s14 + $0x38] sm:$0xff] %v1970_v52  ;;  %v1174_v54 = vadd.f32 %v1581_v51, %v2464_v60 }
 0x261   : > { %v1583_v23 = vpop.f32.mrf.mxu1 }
 0x262   : > { %1977 = vtanh.f32 %v1174_v54  ;;  %v1584_v55 = vadd.f32 %v1583_v23, %v1582_v53 }
 0x263   : > { %v1972_v56 = vpop.eup %1971  ;;  %v1585_v57 = vpop.f32.mrf.mxu1 }
 0x264   : > { %1297 = vst [vmem:[%s2472_s14 + $0x40] sm:$0xff] %v1972_v56  ;;  %v1179_v21 = vadd.f32 %v1584_v55, %v2464_v60 }
 0x265   : > { %v1586_v58 = vpop.f32.mrf.mxu1 }
 0x266   : > { %1979 = vtanh.f32 %v1179_v21  ;;  %v1587_v59 = vadd.f32 %v1586_v58, %v1585_v57 }
 0x267   : > { %v1974_v61 = vpop.eup %1973  ;;  %v1588_v62 = vpop.f32.mrf.mxu1 }
 0x268   : > { %1298 = vst [vmem:[%s2472_s14 + $0x48] sm:$0xff] %v1974_v61  ;;  %v1182_v63 = vadd.f32 %v1587_v59, %v2464_v60 }
 0x269   : > { %v1589_v0 = vpop.f32.mrf.mxu1 }
 0x26a   : > { %1981 = vtanh.f32 %v1182_v63  ;;  %v1590_v1 = vadd.f32 %v1589_v0, %v1588_v62 }
 0x26b   : > { %v1976_v2 = vpop.eup %1975  ;;  %v1591_v3 = vpop.f32.mrf.mxu1 }
 0x26c   : > { %1299 = vst [vmem:[%s2472_s14 + $0x50] sm:$0xff] %v1976_v2  ;;  %v1187_v4 = vadd.f32 %v1590_v1, %v2464_v60 }
 0x26d   : > { %v1592_v5 = vpop.f32.mrf.mxu1 }
 0x26e   : > { %1983 = vtanh.f32 %v1187_v4  ;;  %v1593_v6 = vadd.f32 %v1592_v5, %v1591_v3 }
 0x26f   : > { %v1978_v7 = vpop.eup %1977  ;;  %v1594_v8 = vpop.f32.mrf.mxu1 }
 0x270   : > { %1300 = vst [vmem:[%s2472_s14 + $0x58] sm:$0xff] %v1978_v7  ;;  %v1190_v9 = vadd.f32 %v1593_v6, %v2464_v60 }
 0x271   : > { %v1595_v10 = vpop.f32.mrf.mxu1 }
 0x272   : > { %1985 = vtanh.f32 %v1190_v9  ;;  %v1596_v11 = vadd.f32 %v1595_v10, %v1594_v8 }
 0x273   : > { %v1980_v12 = vpop.eup %1979  ;;  %v1597_v13 = vpop.f32.mrf.mxu1 }
 0x274   : > { %1301 = vst [vmem:[%s2472_s14 + $0x60] sm:$0xff] %v1980_v12  ;;  %v1195_v14 = vadd.f32 %v1596_v11, %v2464_v60 }
 0x275   : > { %v1598_v15 = vpop.f32.mrf.mxu1 }
 0x276   : > { %1987 = vtanh.f32 %v1195_v14  ;;  %v1599_v16 = vadd.f32 %v1598_v15, %v1597_v13 }
 0x277   : > { %v1982_v17 = vpop.eup %1981  ;;  %v1600_v18 = vpop.f32.mrf.mxu1 }
 0x278   : > { %1302 = vst [vmem:[%s2472_s14 + $0x68] sm:$0xff] %v1982_v17  ;;  %v1198_v19 = vadd.f32 %v1599_v16, %v2464_v60 }
 0x279   : > { %v1601_v20 = vpop.f32.mrf.mxu1 }
 0x27a   : > { %1989 = vtanh.f32 %v1198_v19  ;;  %v1602_v22 = vadd.f32 %v1601_v20, %v1600_v18 }
 0x27b   : > { %v1984_v24 = vpop.eup %1983  ;;  %v1603_v25 = vpop.f32.mrf.mxu1 }
 0x27c   : > { %1303 = vst [vmem:[%s2472_s14 + $0x70] sm:$0xff] %v1984_v24  ;;  %v1203_v26 = vadd.f32 %v1602_v22, %v2464_v60 }
 0x27d   : > { %v1604_v27 = vpop.f32.mrf.mxu1 }
 0x27e   : > { %1991 = vtanh.f32 %v1203_v26  ;;  %v1605_v28 = vadd.f32 %v1604_v27, %v1603_v25 }
 0x27f   : > { %v1986_v29 = vpop.eup %1985  ;;  %v1606_v30 = vpop.f32.mrf.mxu1 }
 0x280   : > { %1304 = vst [vmem:[%s2472_s14 + $0x78] sm:$0xff] %v1986_v29  ;;  %v1206_v31 = vadd.f32 %v1605_v28, %v2464_v60 }
 0x281   : > { %v1607_v32 = vpop.f32.mrf.mxu1 }
 0x282   : > { %1993 = vtanh.f32 %v1206_v31  ;;  %v1608_v33 = vadd.f32 %v1607_v32, %v1606_v30 }
 0x283   : > { %v1988_v34 = vpop.eup %1987  ;;  %v1609_v35 = vpop.f32.mrf.mxu1 }
 0x284   : > { %1305 = vst [vmem:[%s2472_s14 + $0x80] sm:$0xff] %v1988_v34  ;;  %v1211_v36 = vadd.f32 %v1608_v33, %v2464_v60 }
 0x285   : > { %v1610_v37 = vpop.f32.mrf.mxu1 }
 0x286   : > { %1995 = vtanh.f32 %v1211_v36  ;;  %v1611_v38 = vadd.f32 %v1610_v37, %v1609_v35 }
 0x287   : > { %v1990_v39 = vpop.eup %1989  ;;  %v1612_v40 = vpop.f32.mrf.mxu1 }
 0x288   : > { %1306 = vst [vmem:[%s2472_s14 + $0x88] sm:$0xff] %v1990_v39  ;;  %v1214_v41 = vadd.f32 %v1611_v38, %v2464_v60 }
 0x289   : > { %v1613_v42 = vpop.f32.mrf.mxu1 }
 0x28a   : > { %1997 = vtanh.f32 %v1214_v41  ;;  %v1614_v43 = vadd.f32 %v1613_v42, %v1612_v40 }
 0x28b   : > { %v1992_v44 = vpop.eup %1991  ;;  %v1615_v45 = vpop.f32.mrf.mxu1 }
 0x28c   : > { %1307 = vst [vmem:[%s2472_s14 + $0x90] sm:$0xff] %v1992_v44  ;;  %v1219_v46 = vadd.f32 %v1614_v43, %v2464_v60 }
 0x28d   : > { %v1616_v47 = vpop.f32.mrf.mxu1 }
 0x28e   : > { %1999 = vtanh.f32 %v1219_v46  ;;  %v1617_v48 = vadd.f32 %v1616_v47, %v1615_v45 }
 0x28f   : > { %v1994_v49 = vpop.eup %1993  ;;  %v1618_v50 = vpop.f32.mrf.mxu1 }
 0x290   : > { %1308 = vst [vmem:[%s2472_s14 + $0x98] sm:$0xff] %v1994_v49  ;;  %v1222_v51 = vadd.f32 %v1617_v48, %v2464_v60 }
 0x291   : > { %v1619_v52 = vpop.f32.mrf.mxu1 }
 0x292   : > { %2001 = vtanh.f32 %v1222_v51  ;;  %v1620_v53 = vadd.f32 %v1619_v52, %v1618_v50 }
 0x293   : > { %v1996_v54 = vpop.eup %1995  ;;  %v1621_v23 = vpop.f32.mrf.mxu1 }
 0x294   : > { %1309 = vst [vmem:[%s2472_s14 + $0xa0] sm:$0xff] %v1996_v54  ;;  %v1227_v55 = vadd.f32 %v1620_v53, %v2464_v60 }
 0x295   : > { %v1622_v56 = vpop.f32.mrf.mxu1 }
 0x296   : > { %2003 = vtanh.f32 %v1227_v55  ;;  %v1623_v57 = vadd.f32 %v1622_v56, %v1621_v23 }
 0x297   : > { %v1998_v21 = vpop.eup %1997  ;;  %v1624_v58 = vpop.f32.mrf.mxu1 }
 0x298   : > { %1310 = vst [vmem:[%s2472_s14 + $0xa8] sm:$0xff] %v1998_v21  ;;  %v1230_v59 = vadd.f32 %v1623_v57, %v2464_v60 }
 0x299   : > { %v1625_v61 = vpop.f32.mrf.mxu1 }
 0x29a   : > { %2005 = vtanh.f32 %v1230_v59  ;;  %v1626_v62 = vadd.f32 %v1625_v61, %v1624_v58 }
 0x29b   : > { %v2000_v63 = vpop.eup %1999  ;;  %v1627_v0 = vpop.f32.mrf.mxu1 }
 0x29c   : > { %1311 = vst [vmem:[%s2472_s14 + $0xb0] sm:$0xff] %v2000_v63  ;;  %v1235_v1 = vadd.f32 %v1626_v62, %v2464_v60 }
 0x29d   : > { %v1628_v2 = vpop.f32.mrf.mxu1 }
 0x29e   : > { %2007 = vtanh.f32 %v1235_v1  ;;  %v1629_v3 = vadd.f32 %v1628_v2, %v1627_v0 }
 0x29f   : > { %v2002_v4 = vpop.eup %2001  ;;  %v1630_v5 = vpop.f32.mrf.mxu1 }
 0x2a0   : > { %1312 = vst [vmem:[%s2472_s14 + $0xb8] sm:$0xff] %v2002_v4  ;;  %v1238_v6 = vadd.f32 %v1629_v3, %v2464_v60 }
 0x2a1   : > { %v1631_v7 = vpop.f32.mrf.mxu1 }
 0x2a2   : > { %2009 = vtanh.f32 %v1238_v6  ;;  %v1632_v8 = vadd.f32 %v1631_v7, %v1630_v5 }
 0x2a3   : > { %v2004_v9 = vpop.eup %2003  ;;  %v1633_v10 = vpop.f32.mrf.mxu1 }
 0x2a4   : > { %1313 = vst [vmem:[%s2472_s14 + $0xc0] sm:$0xff] %v2004_v9  ;;  %v1243_v11 = vadd.f32 %v1632_v8, %v2464_v60 }
 0x2a5   : > { %v1634_v12 = vpop.f32.mrf.mxu1 }
 0x2a6   : > { %2011 = vtanh.f32 %v1243_v11  ;;  %v1635_v13 = vadd.f32 %v1634_v12, %v1633_v10 }
 0x2a7   : > { %v2006_v14 = vpop.eup %2005  ;;  %v1636_v15 = vpop.f32.mrf.mxu1 }
 0x2a8   : > { %1314 = vst [vmem:[%s2472_s14 + $0xc8] sm:$0xff] %v2006_v14  ;;  %v1246_v16 = vadd.f32 %v1635_v13, %v2464_v60 }
 0x2a9   : > { %v1637_v17 = vpop.f32.mrf.mxu1 }
 0x2aa   : > { %2013 = vtanh.f32 %v1246_v16  ;;  %v1638_v18 = vadd.f32 %v1637_v17, %v1636_v15 }
 0x2ab   : > { %v2008_v19 = vpop.eup %2007  ;;  %v1639_v20 = vpop.f32.mrf.mxu1 }
 0x2ac   : > { %1315 = vst [vmem:[%s2472_s14 + $0xd0] sm:$0xff] %v2008_v19  ;;  %v1251_v22 = vadd.f32 %v1638_v18, %v2464_v60 }
 0x2ad   : > { %v1640_v24 = vpop.f32.mrf.mxu1 }
 0x2ae   : > { %2015 = vtanh.f32 %v1251_v22  ;;  %v1641_v25 = vadd.f32 %v1640_v24, %v1639_v20 }
 0x2af   : > { %v2010_v26 = vpop.eup %2009 }
 0x2b0   : > { %1316 = vst [vmem:[%s2472_s14 + $0xd8] sm:$0xff] %v2010_v26  ;;  %v1254_v27 = vadd.f32 %v1641_v25, %v2464_v60 }
 0x2b2   : > { %2017 = vtanh.f32 %v1254_v27 }
 0x2b3   : > { %v2012_v28 = vpop.eup %2011 }
 0x2b4   : > { %1317 = vst [vmem:[%s2472_s14 + $0xe0] sm:$0xff] %v2012_v28 }
 0x2b7   : > { %v2014_v29 = vpop.eup %2013 }
 0x2b8   : > { %1318 = vst [vmem:[%s2472_s14 + $0xe8] sm:$0xff] %v2014_v29 }
 0x2bb   : > { %v2016_v30 = vpop.eup %2015 }
 0x2bc   : > { %1319 = vst [vmem:[%s2472_s14 + $0xf0] sm:$0xff] %v2016_v30 }
 0x2bf   : > { %v2018_v60 = vpop.eup %2017 }
 0x2c0   : > { %1320 = vst [vmem:[%s2472_s14 + $0xf8] sm:$0xff] %v2018_v60 }
 0x2c1   : > { %2112 = shalt.err (!%p2109_p3)
}
 0x2c2   : > { %s2113_s15 = scalar_lea.hbm %s2538_s13, 4096  ;;  %s2117_s9 = scalar_lea.hbm %s2589_s5, 8192 }
 0x2c3   : > { %p2114_p11 = scmp.ne.s32.totalorder %s2538_s13, %s2113_s15  ;;  %p2118_p4 = scmp.lt.s32.totalorder %s2538_s13, %s2589_s5 }
 0x2c4   : > { %p2119_p6 = scmp.lt.s32.totalorder %s2117_s9, %s2113_s15 }
 0x2c5   : > { %p2115_p9 = pnand %p2114_p11, %p2606_p2 }
 0x2c6   : > { %p2120_p8 = por %p2119_p6, %p2118_p4 }
 0x2c7   : > { %p2116_p1 = pneg %p2115_p9 }
 0x2c9   : > { %p2121_p10 = pnand %p2120_p8, %p2116_p1 }
 0x2cb   : > { %2124 = shalt.err (!%p2121_p10)
}
 0x2cc   : > { %s2177_s16 = smov 128   ;;  %s2178_s11 = smov 8  }
 0x2cd   : > { %1652 = dma.vmem_to_hbm [thread:$0]  (%p2606_p2), %s2540_s10, 4096, %s2538_s13, %s1322_s27, %s2177_s16, %s2177_s16, %s2178_s11  }
 0x2ce PF: > { %s1350_s29 = sand.u32 1, %s2155_s18   ;;  %p2607_p7 = scmp.ne.s32.totalorder %s2596_s25, 0 }
 0x2cf   : > { %p2608_p12 = scmp.ge.s32.totalorder %s2167_s21, 2  ;;  %s1351_s23 = scalar_lea.sflag [#allocation4], %s1350_s29 }
 0x2d1   : > { %p1666_p13 = pnand %p2608_p12, %p2607_p7 }
 0x2d3   : > { %p1667_p0 = pneg %p1666_p13 }
 0x2d5   : > { %2150 = dma.done.wait (%p1667_p0), %s1351_s23, 4096  }
 0x2d6   : > { %2152 = vsyncadd (%p1667_p0), %s1351_s23, 4294963200  ;;  %p19_p5 = scmp.ge.s32.totalorder %s2284_s17, 4   ;;  %s2609_s18 = smov %s2159_s19 }
 0x2d7   : > { %s2610_s19 = smov %s2163_s20  ;;  %s2611_s20 = smov %s2293_s28 }
 0x2d8   : > { %s2612_s21 = smov %s2284_s17  ;;  %21 = sbr.rel (!%p19_p5) target bundleno = 6 (0x6), region = 93 }
 0x2dd   :  { %1356 = vsyncpa [#allocation3], 1 }
 0x2de   :  { %1358 = vsyncpa [#allocation3 + $0x1], 1 }
 0x2df   :  { %1359 = vsyncpa [#allocation6], 1 }
 0x2e0   :  { %1360 = vsyncpa [#allocation4], 1 }
 0x2e1   :  { %1362 = vsyncpa [#allocation4 + $0x1], 1 }

// kernel: tpu_custom_call.1
= control target key start
LH: loop header
LB: loop body
LE: loop exit
PB: predicated region body
PF: predicated region fallthrough
CT: control target
= control target key end

     0   :  { %10 = vsyncpa [#allocation3], 0  ;;  %s2584_s0 = inlined_call_operand.hbm [shape: bf16[512,256], index: 0, kind: input, shape index: {}]   ;;  %s2585_s1 = inlined_call_operand.hbm [shape: bf16[256,256], index: 1, kind: input, shape index: {}]   ;;  %s2586_s2 = inlined_call_operand.vmem [shape: f32[1,256], index: 2, kind: input, shape index: {}]   ;;  %s2587_s3 = inlined_call_operand.hbm [shape: bf16[256,128], index: 3, kind: input, shape index: {}]   ;;  %s2588_s4 = inlined_call_operand.vmem [shape: f32[1,128], index: 4, kind: input, shape index: {}]   ;;  %s2589_s5 = inlined_call_operand.hbm [shape: f32[512,128], index: 5, kind: output, shape index: {}]  }
   0x1   :  { %12 = vsyncpa [#allocation3 + $0x1], 0 }
   0x2   :  { %13 = vsyncpa [#allocation6], 0 }
   0x3   :  { %14 = vsyncpa [#allocation4], 0 }
   0x4   :  { %16 = vsyncpa [#allocation4 + $0x1], 0  ;;  %s2209_s18 = smov 0   ;;  %s2211_s19 = smov 0  }
   0x5   :  { %s2213_s20 = smov 0   ;;  %s2215_s21 = smov 0  }
   0x6 LB: > { %s2230_s22 = sadd.s32 4294967295, %s2167_s21   ;;  %s1427_s23 = sadd.s32 4294967294, %s2167_s21   ;;  %s2167_s21 = sphi %s2215_s21, %s2612_s21   ;;  %s2163_s20 = sphi %s2213_s20, %s2611_s20   ;;  %s2159_s19 = sphi %s2211_s19, %s2610_s19   ;;  %s2155_s18 = sphi %s2209_s18, %s2609_s18  }
   0x7   : > { %p42_p0 = scmp.ne.s32.totalorder %s2159_s19, %s2155_s18  ;;  %p2590_p1 = scmp.eq.s32.totalorder %s2230_s22, 0 }
   0x8   : > { %p150_p2 = scmp.eq.s32.totalorder %s2230_s22, 1  ;;  %p156_p3 = scmp.eq.s32.totalorder %s1427_s23, 1 }
   0x9   : > { %p2239_p4 = por %p2590_p1, %p42_p0  ;;  %p1428_p5 = scmp.ge.s32.totalorder %s2167_s21, 1 }
   0xa   : > { %p2244_p6 = por %p156_p3, %p42_p0  ;;  %p163_p7 = scmp.lt.s32.totalorder %s2167_s21, 3 }
   0xb   : > { %s2595_s24 = scalar_select %p2239_p4, 1, 0 }
   0xc   : > { %s2596_s25 = scalar_select %p2244_p6, 1, 0 }
   0xd   : > { %p2249_p8 = pnand %p1428_p5, %p163_p7  ;;  %s2169_s27 = smov [#allocation5]  }
   0xe   : > { %s175_s28 = sshll.u32 %s2169_s27, 4  ;;  %s2170_s30 = smov [#allocation7]   ;;  %s176_s28 = int_to_ptr.vmem [resolvable:$true] %s175_s28 }
   0xf   : > { %s2597_s26 = scalar_select %p2249_p8, 1, 0 }
  0x10   : > { %p1654_p9 = pneg %p2249_p8  ;;  %s191_s6 = sshll.u32 %s2170_s30, 4  ;;  %s192_s6 = int_to_ptr.vmem [resolvable:$true] %s191_s6 }
  0x11   : > { %s2030_s7 = scalar_lea.vmem %s176_s28, 4096  ;;  %p2038_p5 = scmp.lt.s32.totalorder %s176_s28, %s176_s28 }
  0x12   : > { %p2258_p11 = pnand %p1654_p9, %p2590_p1  ;;  %p2031_p13 = scmp.ne.s32.totalorder %s176_s28, %s2030_s7 }
  0x13   : > { %p2039_p7 = scmp.lt.s32.totalorder %s2030_s7, %s2030_s7 }
  0x14   : > { %p2021_p12 = pneg %p2258_p11 }
  0x15   : > { %p2040_p10 = por %p2039_p7, %p2038_p5 }
  0x16   : > { %p2033_p0 = pnand %p2031_p13, %p2021_p12 }
  0x18   : > { %p2034_p3 = pneg %p2033_p0 }
  0x1a   : > { %p2041_p9 = pnand %p2040_p10, %p2034_p3 }
  0x1c   : > { %2044 = shalt.err (!%p2041_p9)
}
  0x1d   : > { %s2591_s8 = smov 128   ;;  %s2172_s9 = smov 8  }
  0x1e   : > { %1657 = dma.hbm_to_vmem [thread:$0]  (!%p2258_p11), %s2585_s1, 4096, %s176_s28, [#allocation6], %s2591_s8, %s2591_s8, %s2172_s9  }
  0x1f   : > { %s2056_s12 = scalar_lea.vmem %s192_s6, 2048  ;;  %p2064_p10 = scmp.lt.s32.totalorder %s192_s6, %s192_s6 }
  0x20   : > { %p2057_p13 = scmp.ne.s32.totalorder %s192_s6, %s2056_s12  ;;  %p2065_p3 = scmp.lt.s32.totalorder %s2056_s12, %s2056_s12 }
  0x22   : > { %p2059_p0 = pnand %p2057_p13, %p2021_p12  ;;  %p2066_p7 = por %p2065_p3, %p2064_p10 }
  0x24   : > { %p2060_p5 = pneg %p2059_p0 }
  0x26   : > { %p2067_p9 = pnand %p2066_p7, %p2060_p5 }
  0x28   : > { %2070 = shalt.err (!%p2067_p9)
}
  0x29   : > { %s2173_s13 = smov 64   ;;  %s2174_s14 = smov 4  }
  0x2a   : > { %1660 = dma.hbm_to_vmem [thread:$0]  (!%p2258_p11), %s2587_s3, 2048, %s192_s6, [#allocation6], %s2173_s13, %s2173_s13, %s2174_s14  }
  0x2b   : > { %s2284_s17 = sadd.s32 1, %s2167_s21   ;;  %s29_s27 = sadd.s32 1, %s2163_s20 }
  0x2c   : > { %s26_s23 = ssub.s32 %s2167_s21, %s2284_s17  ;;  %p36_p13 = scmp.ne.s32.totalorder %s2163_s20, %s2159_s19 }
  0x2d   : > { %p27_p12 = scmp.eq.s32.totalorder %s26_s23, 0  ;;  %p37_p0 = scmp.eq.s32.totalorder %s2167_s21, 0 }
  0x2e   : > { %p2297_p10 = por %p150_p2, %p36_p13  ;;  %p1671_p3 = scmp.lt.s32.totalorder %s2167_s21, 2 }
  0x2f   : > { %s2293_s28 = scalar_select %p27_p12, %s2163_s20, %s29_s27  }
  0x30   : > { %p38_p5 = por %p37_p0, %p36_p13  ;;  %s208_s29 = sand.u32 1, %s2163_s20  }
  0x31   : > { %s2599_s30 = scalar_select %p2297_p10, 1, 0 }
  0x32   : > { %s1432_s7 = sshll.u32 %s208_s29, 8  ;;  %s1528_s6 = sshll.u32 %s2167_s21, 12 }
  0x33   : > { %s2307_s12 = scalar_lea.hbm %s2584_s0, %s1528_s6  ;;  %s212_s13 = scalar_lea.vmem [#allocation2], %s1432_s7 }
  0x34   : > { %s220_s14 = sshll.u32 %s212_s13, 4  ;;  %p2311_p2 = pnand %p1671_p3, %p38_p5  ;;  %s2309_s14 = int_to_ptr.vmem [resolvable:$true] %s220_s14 }
  0x35   : > { %s2315_s16 = scalar_lea.sflag [#allocation3], %s208_s29  ;;  %s2071_s23 = scalar_lea.hbm %s2307_s12, 4096 }
  0x36   : > { %p2072_p11 = scmp.ne.s32.totalorder %s2307_s12, %s2071_s23  ;;  %p2073_p7 = pneg %p2311_p2 }
  0x37   : > { %s2076_s7 = scalar_lea.hbm %s2584_s0, 8192  ;;  %p2077_p13 = scmp.lt.s32.totalorder %s2307_s12, %s2584_s0 }
  0x38   : > { %p2074_p9 = pnand %p2073_p7, %p2072_p11  ;;  %p2078_p0 = scmp.lt.s32.totalorder %s2076_s7, %s2071_s23 }
  0x3a   : > { %p2075_p12 = pneg %p2074_p9  ;;  %p2079_p5 = por %p2078_p0, %p2077_p13 }
  0x3c   : > { %p2080_p3 = pnand %p2079_p5, %p2075_p12 }
  0x3e   : > { %2083 = shalt.err (!%p2080_p3)
}
  0x3f   : > { %s2084_s29 = scalar_lea.vmem %s2309_s14, 4096  ;;  %s2175_s13 = smov [#allocation2]  }
  0x40   : > { %p2085_p1 = scmp.ne.s32.totalorder %s2309_s14, %s2084_s29  ;;  %s2089_s8 = sshll.u32 %s2175_s13, 4  ;;  %s2090_s8 = int_to_ptr.vmem [resolvable:$false] %s2089_s8 }
  0x41   : > { %s2091_s27 = scalar_lea.vmem %s2090_s8, 8192  ;;  %p2092_p9 = scmp.lt.s32.totalorder %s2309_s14, %s2090_s8 }
  0x42   : > { %p2087_p6 = pnand %p2085_p1, %p2073_p7  ;;  %p2093_p10 = scmp.lt.s32.totalorder %s2091_s27, %s2084_s29 }
  0x44   : > { %p2088_p11 = pneg %p2087_p6  ;;  %p2094_p4 = por %p2093_p10, %p2092_p9 }
  0x46   : > { %p2095_p8 = pnand %p2094_p4, %p2088_p11 }
  0x48   : > { %2098 = shalt.err (!%p2095_p8)
}
  0x49   : > { %s2601_s23 = smov 128   ;;  %p2602_p1 = scmp.ne.s32.totalorder %s2597_s26, 0 }
  0x4a   : > { %1664 = dma.hbm_to_vmem [thread:$0]  (!%p2311_p2), %s2307_s12, 4096, %s2309_s14, %s2315_s16, %s2601_s23, %s2601_s23, %s2172_s9  }
  0x4b   : > { %232 = sbr.rel (%p2602_p1) target bundleno = 718 (0x2ce), region = 40  ;;  %s2342_s6 = sand.u32 (!%p2602_p1), 1, %s2159_s19  }
  0x4c   : > { %s1437_s8 = sshll.u32 (!%p2602_p1), %s2342_s6, 8  ;;  %s235_s7 = scalar_lea.sflag (!%p2602_p1), [#allocation3], %s2342_s6 }
  0x4d   : > { %s2348_s15 = scalar_lea.vmem (!%p2602_p1), [#allocation2], %s1437_s8  ;;  %p2603_p4 = scmp.ne.s32.totalorder (!%p2602_p1), %s2595_s24, 0 }
  0x50   : > { %2142 = dma.done.wait (%p2603_p4), %s235_s7, 4096  }
  0x51   : > { %2144 = vsyncadd (%p2603_p4), %s235_s7, 4294963200  ;;  %p2604_p6 = scmp.eq.s32.totalorder %s2230_s22, 0 }
  0x53   : > { %2146 = dma.done.wait (%p2604_p6), [#allocation6], 6144   ;;  %p2605_p8 = pmov %p2604_p6 }
  0x54   : > { %v1715_v0 = vld [vmem:[#allocation5 + $0x74] ss:$8 sps:$4 sm:$0xff]   ;;  %v1717_v1 = vld [vmem:[#allocation5 + $0x70] ss:$8 sps:$4 sm:$0xff]   ;;  %v1718_v2 = vld [vmem:[#allocation5 + $0x64] ss:$8 sps:$4 sm:$0xff]  }
  0x55   : > { %2148 = vsyncadd (%p2605_p8), [#allocation6], 4294961152  ;;  %672 = vmatprep.subr.bf16.mxu0 %v1715_v0  ;;  %v1720_v3 = vld [vmem:[#allocation5 + $0x60] ss:$8 sps:$4 sm:$0xff]   ;;  %v1721_v4 = vld [vmem:[#allocation5 + $0x54] ss:$8 sps:$4 sm:$0xff]  }
  0x56   : > { %673 = vmatpush1.bf16.msra.mxu0 %v1717_v1  ;;  %v1723_v5 = vld [vmem:[#allocation5 + $0x50] ss:$8 sps:$4 sm:$0xff]   ;;  %v1724_v6 = vld [vmem:[#allocation5 + $0x44] ss:$8 sps:$4 sm:$0xff]   ;;  %v1726_v7 = vld [vmem:[#allocation5 + $0x40] ss:$8 sps:$4 sm:$0xff]  }
  0x57   : > { %674 = vmatprep.subr.bf16.mxu0 %v1718_v2  ;;  %v1727_v8 = vld [vmem:[#allocation5 + $0x34] ss:$8 sps:$4 sm:$0xff]   ;;  %v1729_v9 = vld [vmem:[#allocation5 + $0x30] ss:$8 sps:$4 sm:$0xff]   ;;  %v1730_v10 = vld [vmem:[#allocation5 + $0x24] ss:$8 sps:$4 sm:$0xff]  }
  0x58   : > { %v1732_v11 = vld [vmem:[#allocation5 + $0x20] ss:$8 sps:$4 sm:$0xff]   ;;  %v1733_v12 = vld [vmem:[#allocation5 + $0x14] ss:$8 sps:$4 sm:$0xff]   ;;  %v1765_v13 = vld [vmem:[%s2348_s15 + $0x4] ss:$8 sps:$4 sm:$0xff]  }
  0x59   : > { %v1735_v14 = vld [vmem:[#allocation5 + $0x10] ss:$8 sps:$4 sm:$0xff]   ;;  %v1736_v15 = vld [vmem:[#allocation5 + $0x4] ss:$8 sps:$4 sm:$0xff]   ;;  %704 = vmatprep.mubr.bf16.mxu0 %v1765_v13  ;;  %v1738_v16 = vld [vmem:[#allocation5] ss:$8 sps:$4 sm:$0xff]  }
  0x5a   : > { %675 = vmatpush1.bf16.msra.mxu0 %v1720_v3  ;;  %v1739_v17 = vld [vmem:[#allocation5 + $0xf4] ss:$8 sps:$4 sm:$0xff]   ;;  %v1741_v18 = vld [vmem:[#allocation5 + $0xf0] ss:$8 sps:$4 sm:$0xff]   ;;  %v1742_v19 = vld [vmem:[#allocation5 + $0xe4] ss:$8 sps:$4 sm:$0xff]  }
  0x5b   : > { %676 = vmatprep.subr.bf16.mxu0 %v1721_v4  ;;  %v1744_v20 = vld [vmem:[#allocation5 + $0xe0] ss:$8 sps:$4 sm:$0xff]   ;;  %v1745_v21 = vld [vmem:[#allocation5 + $0xd4] ss:$8 sps:$4 sm:$0xff]   ;;  %v1747_v22 = vld [vmem:[#allocation5 + $0xd0] ss:$8 sps:$4 sm:$0xff]  }
  0x5c   : > { %v1748_v23 = vld [vmem:[#allocation5 + $0xc4] ss:$8 sps:$4 sm:$0xff]   ;;  %v1750_v24 = vld [vmem:[#allocation5 + $0xc0] ss:$8 sps:$4 sm:$0xff]   ;;  %v1751_v25 = vld [vmem:[#allocation5 + $0xb4] ss:$8 sps:$4 sm:$0xff]  }
  0x5d   : > { %v1753_v26 = vld [vmem:[#allocation5 + $0xb0] ss:$8 sps:$4 sm:$0xff]   ;;  %v1754_v27 = vld [vmem:[#allocation5 + $0xa4] ss:$8 sps:$4 sm:$0xff]   ;;  %v1756_v28 = vld [vmem:[#allocation5 + $0xa0] ss:$8 sps:$4 sm:$0xff]  }
  0x5e   : > { %677 = vmatpush1.bf16.msra.mxu0 %v1723_v5  ;;  %v1757_v29 = vld [vmem:[#allocation5 + $0x94] ss:$8 sps:$4 sm:$0xff]   ;;  %v1759_v30 = vld [vmem:[#allocation5 + $0x90] ss:$8 sps:$4 sm:$0xff]   ;;  %v1760_v31 = vld [vmem:[#allocation5 + $0x84] ss:$8 sps:$4 sm:$0xff]  }
  0x5f   : > { %678 = vmatprep.subr.bf16.mxu0 %v1724_v6  ;;  %v1811_v32 = vld [vmem:[#allocation7 + $0x78] sm:$0xff]   ;;  %v1813_v34 = vld [vmem:[#allocation7 + $0x70] sm:$0xff]   ;;  %v1762_v35 = vld [vmem:[#allocation5 + $0x80] ss:$8 sps:$4 sm:$0xff]   ;;  %s2472_s14 = scalar_lea.vmem [#allocation8], %s1437_s8  ;;  %s1529_s16 = sshll.u32 %s2230_s22, 12 }
  0x60   : > { %v1812_v33 = vld [vmem:[#allocation7 + $0x38] sm:$0xff]   ;;  %1530 = vmatprep.subr.bf16.mxu1 %v1811_v32  ;;  %v1814_v36 = vld [vmem:[#allocation7 + $0x30] sm:$0xff]   ;;  %v1763_v37 = vld [vmem:[%s2348_s15] ss:$8 sps:$4 sm:$0xff]   ;;  %s1335_s10 = sshll.u32 %s2472_s14, 4  ;;  %s2538_s13 = scalar_lea.hbm %s2589_s5, %s1529_s16  ;;  %s2540_s10 = int_to_ptr.vmem [resolvable:$true] %s1335_s10 }
  0x61   : > { %1531 = vmatpush3.bf16.msra.mxu1 %v1812_v33  ;;  %v1766_v38 = vld [vmem:[%s2348_s15 + $0x14] ss:$8 sps:$4 sm:$0xff]   ;;  %v1768_v39 = vld [vmem:[%s2348_s15 + $0x10] ss:$8 sps:$4 sm:$0xff]   ;;  %v1769_v40 = vld [vmem:[%s2348_s15 + $0x24] ss:$8 sps:$4 sm:$0xff]  }
  0x62   : > { %679 = vmatpush1.bf16.msra.mxu0 %v1726_v7  ;;  %1532 = vmatprep.subr.bf16.mxu1 %v1813_v34  ;;  %v1771_v41 = vld [vmem:[%s2348_s15 + $0x20] ss:$8 sps:$4 sm:$0xff]   ;;  %v1772_v42 = vld [vmem:[%s2348_s15 + $0x34] ss:$8 sps:$4 sm:$0xff]   ;;  %v1774_v43 = vld [vmem:[%s2348_s15 + $0x30] ss:$8 sps:$4 sm:$0xff]  }
  0x63   : > { %680 = vmatprep.subr.bf16.mxu0 %v1727_v8  ;;  %v1775_v44 = vld [vmem:[%s2348_s15 + $0x44] ss:$8 sps:$4 sm:$0xff]   ;;  %v1777_v45 = vld [vmem:[%s2348_s15 + $0x40] ss:$8 sps:$4 sm:$0xff]   ;;  %v1778_v46 = vld [vmem:[%s2348_s15 + $0x54] ss:$8 sps:$4 sm:$0xff]  }
  0x64   : > { %v1780_v47 = vld [vmem:[%s2348_s15 + $0x50] ss:$8 sps:$4 sm:$0xff]   ;;  %v1781_v48 = vld [vmem:[%s2348_s15 + $0x64] ss:$8 sps:$4 sm:$0xff]   ;;  %v1783_v49 = vld [vmem:[%s2348_s15 + $0x60] ss:$8 sps:$4 sm:$0xff]  }
  0x65   : > { %1533 = vmatpush3.bf16.msra.mxu1 %v1814_v36  ;;  %v1784_v50 = vld [vmem:[%s2348_s15 + $0x74] ss:$8 sps:$4 sm:$0xff]   ;;  %v1786_v51 = vld [vmem:[%s2348_s15 + $0x70] ss:$8 sps:$4 sm:$0xff]   ;;  %v1787_v52 = vld [vmem:[%s2348_s15 + $0x84] ss:$8 sps:$4 sm:$0xff]  }
  0x66   : > { %681 = vmatpush1.bf16.msra.mxu0 %v1729_v9  ;;  %v1789_v53 = vld [vmem:[%s2348_s15 + $0x80] ss:$8 sps:$4 sm:$0xff]   ;;  %v1790_v54 = vld [vmem:[%s2348_s15 + $0x94] ss:$8 sps:$4 sm:$0xff]   ;;  %v1792_v57 = vld [vmem:[%s2348_s15 + $0x90] ss:$8 sps:$4 sm:$0xff]  }
  0x67   : > { %682 = vmatprep.subr.bf16.mxu0 %v1730_v10  ;;  %v1815_v55 = vld [vmem:[#allocation7 + $0x68] sm:$0xff]   ;;  %v1817_v58 = vld [vmem:[#allocation7 + $0x60] sm:$0xff]   ;;  %v1819_v61 = vld [vmem:[#allocation7 + $0x58] sm:$0xff]   ;;  %s1322_s27 = scalar_lea.sflag [#allocation4], %s2342_s6  ;;  %s2099_s23 = scalar_lea.vmem %s2540_s10, 4096 }
  0x68   : > { %v1816_v56 = vld [vmem:[#allocation7 + $0x28] sm:$0xff]   ;;  %1534 = vmatprep.subr.bf16.mxu1 %v1815_v55  ;;  %v1818_v60 = vld [vmem:[#allocation7 + $0x20] sm:$0xff]   ;;  %v1820_v62 = vld [vmem:[#allocation7 + $0x18] sm:$0xff]   ;;  %p2100_p10 = scmp.ne.s32.totalorder %s2540_s10, %s2099_s23  ;;  %p2606_p2 = scmp.ne.s32.totalorder %s2599_s30, 0 }
  0x69   : > { %1535 = vmatpush3.bf16.msra.mxu1 %v1816_v56  ;;  %v1793_v59 = vld [vmem:[%s2348_s15 + $0xa4] ss:$8 sps:$4 sm:$0xff]   ;;  %v1795_v63 = vld [vmem:[%s2348_s15 + $0xa0] ss:$8 sps:$4 sm:$0xff]   ;;  %v1821_v0 = vld [vmem:[#allocation7 + $0x50] sm:$0xff]   ;;  %s2176_s22 = smov [#allocation8]  }
  0x6a   : > { %683 = vmatpush1.bf16.msra.mxu0 %v1732_v11  ;;  %1536 = vmatprep.subr.bf16.mxu1 %v1817_v58  ;;  %v1796_v1 = vld [vmem:[%s2348_s15 + $0xb4] ss:$8 sps:$4 sm:$0xff]   ;;  %v1823_v3 = vld [vmem:[#allocation7 + $0x48] sm:$0xff]   ;;  %v1798_v5 = vld [vmem:[%s2348_s15 + $0xb0] ss:$8 sps:$4 sm:$0xff]   ;;  %p2101_p7 = pnand %p2100_p10, %p2606_p2  ;;  %s2103_s8 = sshll.u32 %s2176_s22, 4  ;;  %s2104_s8 = int_to_ptr.vmem [resolvable:$false] %s2103_s8 }
  0x6b   : > { %684 = vmatprep.subr.bf16.mxu0 %v1733_v12  ;;  %v1822_v2 = vld [vmem:[#allocation7 + $0x10] sm:$0xff]   ;;  %v1824_v4 = vld [vmem:[#allocation7 + $0x8] sm:$0xff]   ;;  %v1825_v6 = vld [vmem:[#allocation7 + $0x40] sm:$0xff]   ;;  %s2105_s7 = scalar_lea.vmem %s2104_s8, 8192  ;;  %p2106_p13 = scmp.lt.s32.totalorder %s2540_s10, %s2104_s8 }
  0x6c   : > { %v1799_v7 = vld [vmem:[%s2348_s15 + $0xc4] ss:$8 sps:$4 sm:$0xff]   ;;  %v1801_v9 = vld [vmem:[%s2348_s15 + $0xc0] ss:$8 sps:$4 sm:$0xff]   ;;  %v1802_v10 = vld [vmem:[%s2348_s15 + $0xd4] ss:$8 sps:$4 sm:$0xff]   ;;  %p2102_p12 = pneg %p2101_p7  ;;  %p2107_p0 = scmp.lt.s32.totalorder %s2105_s7, %s2099_s23 }
  0x6d   : > { %1537 = vmatpush3.bf16.msra.mxu1 %v1818_v60  ;;  %v1826_v8 = vld [vmem:[#allocation7] sm:$0xff]   ;;  %v1804_v11 = vld [vmem:[%s2348_s15 + $0xd0] ss:$8 sps:$4 sm:$0xff]  }
  0x6e   : > { %685 = vmatpush1.bf16.msra.mxu0 %v1735_v14  ;;  %1538 = vmatprep.subr.bf16.mxu1 %v1819_v61  ;;  %v1805_v12 = vld [vmem:[%s2348_s15 + $0xe4] ss:$8 sps:$4 sm:$0xff]   ;;  %v1807_v13 = vld [vmem:[%s2348_s15 + $0xe0] ss:$8 sps:$4 sm:$0xff]   ;;  %v1808_v14 = vld [vmem:[%s2348_s15 + $0xf4] ss:$8 sps:$4 sm:$0xff]   ;;  %p2108_p5 = por %p2107_p0, %p2106_p13 }
  0x6f   : > { %686 = vmatprep.subr.bf16.mxu0 %v1736_v15  ;;  %v1810_v15 = vld [vmem:[%s2348_s15 + $0xf0] ss:$8 sps:$4 sm:$0xff]  }
  0x70   : > { %p2109_p3 = pnand %p2108_p5, %p2102_p12 }
  0x71   : > { %1539 = vmatpush3.bf16.msra.mxu1 %v1820_v62 }
  0x72   : > { %687 = vmatpush1.bf16.msra.mxu0 %v1738_v16  ;;  %1540 = vmatprep.subr.bf16.mxu1 %v1821_v0  ;;  %v342_v16 = vlaneseq }
  0x73   : > { %688 = vmatprep.subr.bf16.mxu0 %v1739_v17 }
  0x74   : > { %v343_v17 = vshrl.u32 %v342_v16, 7 }
  0x75   : > { %1541 = vmatpush3.bf16.msra.mxu1 %v1822_v2 }
  0x76   : > { %689 = vmatpush2.bf16.msra.mxu0 %v1741_v18  ;;  %1542 = vmatprep.subr.bf16.mxu1 %v1823_v3  ;;  %v348_v18 = vsub.s32 1, %v343_v17 }
  0x77   : > { %690 = vmatprep.subr.bf16.mxu0 %v1742_v19  ;;  %v340_v19 = vld [vmem:[%s2586_s2] sm:$0x3] }
  0x79   : > { %1543 = vmatpush3.bf16.msra.mxu1 %v1824_v4 }
  0x7a   : > { %691 = vmatpush2.bf16.msra.mxu0 %v1744_v20  ;;  %1544 = vmatprep.subr.bf16.mxu1 %v1825_v6  ;;  %v344_v20 = vsub.s32 0, %v343_v17 }
  0x7b   : > { %692 = vmatprep.subr.bf16.mxu0 %v1745_v21  ;;  %v2393_v21 = vrot.slane %v340_v19, %v348_v18 }
  0x7d   : > { %1545 = vmatpush3.bf16.msra.mxu1 %v1826_v8 }
  0x7e   : > { %693 = vmatpush2.bf16.msra.mxu0 %v1747_v22 }
  0x7f   : > { %694 = vmatprep.subr.bf16.mxu0 %v1748_v23  ;;  %v2395_v23 = vrot.slane %v340_v19, %v344_v20 }
  0x82   : > { %695 = vmatpush2.bf16.msra.mxu0 %v1750_v24 }
  0x83   : > { %696 = vmatprep.subr.bf16.mxu0 %v1751_v25 }
  0x86   : > { %697 = vmatpush2.bf16.msra.mxu0 %v1753_v26 }
  0x87   : > { %698 = vmatprep.subr.bf16.mxu0 %v1754_v27 }
  0x8a   : > { %699 = vmatpush2.bf16.msra.mxu0 %v1756_v28 }
  0x8b   : > { %700 = vmatprep.subr.bf16.mxu0 %v1757_v29 }
  0x8e   : > { %701 = vmatpush2.bf16.msra.mxu0 %v1759_v30 }
  0x8f   : > { %702 = vmatprep.subr.bf16.mxu0 %v1760_v31 }
  0x92   : > { %703 = vmatpush2.bf16.msra.mxu0 %v1762_v35 }
  0x95   : > { %705 = vmatmul.mubr.bf16.vlgmr.msra.gmra.mxu0 %v1763_v37 }
  0x96   : > { %714 = vmatprep.mubr.bf16.mxu0 %v1766_v38 }
  0x9d   : > { %715 = vmatmul.mubr.bf16.gmra.mxu0 %v1768_v39 }
  0x9e   : > { %724 = vmatprep.mubr.bf16.mxu0 %v1769_v40 }
  0xa5   : > { %725 = vmatmul.mubr.bf16.gmra.mxu0 %v1771_v41 }
  0xa6   : > { %734 = vmatprep.mubr.bf16.mxu0 %v1772_v42 }
  0xad   : > { %735 = vmatmul.mubr.bf16.gmra.mxu0 %v1774_v43 }
  0xae   : > { %744 = vmatprep.mubr.bf16.mxu0 %v1775_v44 }
  0xb5   : > { %745 = vmatmul.mubr.bf16.gmra.mxu0 %v1777_v45 }
  0xb6   : > { %754 = vmatprep.mubr.bf16.mxu0 %v1778_v46 }
  0xbd   : > { %755 = vmatmul.mubr.bf16.gmra.mxu0 %v1780_v47 }
  0xbe   : > { %764 = vmatprep.mubr.bf16.mxu0 %v1781_v48 }
  0xc5   : > { %765 = vmatmul.mubr.bf16.gmra.mxu0 %v1783_v49 }
  0xc6   : > { %774 = vmatprep.mubr.bf16.mxu0 %v1784_v50 }
  0xcd   : > { %775 = vmatmul.mubr.bf16.gmra.mxu0 %v1786_v51 }
  0xce   : > { %784 = vmatprep.mubr.bf16.mxu0 %v1787_v52 }
  0xd5   : > { %785 = vmatmul.mubr.bf16.gmra.mxu0 %v1789_v53 }
  0xd6   : > { %794 = vmatprep.mubr.bf16.mxu0 %v1790_v54 }
  0xdd   : > { %795 = vmatmul.mubr.bf16.gmra.mxu0 %v1792_v57 }
  0xde   : > { %804 = vmatprep.mubr.bf16.mxu0 %v1793_v59 }
  0xe5   : > { %805 = vmatmul.mubr.bf16.gmra.mxu0 %v1795_v63 }
  0xe6   : > { %814 = vmatprep.mubr.bf16.mxu0 %v1796_v1 }
  0xed   : > { %815 = vmatmul.mubr.bf16.gmra.mxu0 %v1798_v5 }
  0xee   : > { %824 = vmatprep.mubr.bf16.mxu0 %v1799_v7 }
  0xf5   : > { %825 = vmatmul.mubr.bf16.gmra.mxu0 %v1801_v9 }
  0xf6   : > { %834 = vmatprep.mubr.bf16.mxu0 %v1802_v10 }
  0xfd   : > { %835 = vmatmul.mubr.bf16.gmra.mxu0 %v1804_v11 }
  0xfe   : > { %844 = vmatprep.mubr.bf16.mxu0 %v1805_v12 }
 0x105   : > { %845 = vmatmul.mubr.bf16.gmra.mxu0 %v1807_v13 }
 0x106   : > { %854 = vmatprep.mubr.bf16.mxu0 %v1808_v14 }
 0x10d   : > { %855 = vmatmul.mubr.bf16.gmra.mxu0 %v1810_v15 }
 0x155   : > { %v706_v22 = vpop.f32.mrf.mxu0 }
 0x156   : > { %v707_v28 = vadd.f32 %v706_v22, %v2395_v23 }
 0x157   : > { %v708_v24 = vpop.f32.mrf.mxu0 }
 0x158   : > { %v709_v25 = vadd.f32 %v708_v24, %v2393_v21 }
 0x159   : > { %v710_v26 = vpop.f32.mrf.mxu0 }
 0x15a   : > { %v711_v27 = vadd.f32 %v710_v26, %v2395_v23  ;;  %1827 = vtanh.f32 %v709_v25 }
 0x15b   : > { %v712_v29 = vpop.f32.mrf.mxu0 }
 0x15c   : > { %v713_v30 = vadd.f32 %v712_v29, %v2393_v21  ;;  %1829 = vtanh.f32 %v711_v27 }
 0x15d   : > { %v716_v31 = vpop.f32.mrf.mxu0 }
 0x15e   : > { %1831 = vtanh.f32 %v713_v30  ;;  %v717_v36 = vadd.f32 %v716_v31, %v2395_v23 }
 0x15f   : > { %1833 = vtanh.f32 %v707_v28  ;;  %v718_v32 = vpop.f32.mrf.mxu0 }
 0x160   : > { %v719_v33 = vadd.f32 %v718_v32, %v2393_v21 }
 0x161   : > { %v720_v34 = vpop.f32.mrf.mxu0 }
 0x162   : > { %v721_v35 = vadd.f32 %v720_v34, %v2395_v23  ;;  %1835 = vtanh.f32 %v719_v33 }
 0x163   : > { %v722_v37 = vpop.f32.mrf.mxu0 }
 0x164   : > { %v723_v38 = vadd.f32 %v722_v37, %v2393_v21  ;;  %1837 = vtanh.f32 %v721_v35 }
 0x165   : > { %v726_v39 = vpop.f32.mrf.mxu0 }
 0x166   : > { %1839 = vtanh.f32 %v723_v38  ;;  %v727_v47 = vadd.f32 %v726_v39, %v2395_v23 }
 0x167   : > { %1841 = vtanh.f32 %v717_v36  ;;  %v728_v40 = vpop.f32.mrf.mxu0  ;;  %v1828_v42 = vpop.eup %1827 }
 0x168   : > { %v729_v41 = vadd.f32 %v728_v40, %v2393_v21 }
 0x169   : > { %v730_v43 = vpop.f32.mrf.mxu0  ;;  %v1830_v44 = vpop.eup %1829 }
 0x16a   : > { %v731_v45 = vadd.f32 %v730_v43, %v2395_v23  ;;  %1843 = vtanh.f32 %v729_v41 }
 0x16b   : > { %v1832_v46 = vpop.eup %1831  ;;  %v732_v48 = vpop.f32.mrf.mxu0 }
 0x16c   : > { %v1834_v49 = vpop.eup %1833  ;;  %v733_v50 = vadd.f32 %v732_v48, %v2393_v21  ;;  %v963_v51 = vpack.c.bf16 %v1832_v46, %v1828_v42  ;;  %1845 = vtanh.f32 %v731_v45 }
 0x16d   : > { %v736_v52 = vpop.f32.mrf.mxu0  ;;  %v962_v53 = vpack.c.bf16 %v1830_v44, %v1834_v49 }
 0x16e   : > { %1847 = vtanh.f32 %v733_v50  ;;  %1128 = vmatprep.mubr.bf16.mxu1 %v963_v51  ;;  %v737_v61 = vadd.f32 %v736_v52, %v2395_v23 }
 0x16f   : > { %1849 = vtanh.f32 %v727_v47  ;;  %v738_v54 = vpop.f32.mrf.mxu0  ;;  %1129 = vmatmul.mubr.bf16.vlgmr.msra.gmra.mxu1 %v962_v53  ;;  %v1836_v56 = vpop.eup %1835 }
 0x170   : > { %v739_v55 = vadd.f32 %v738_v54, %v2393_v21 }
 0x171   : > { %v740_v57 = vpop.f32.mrf.mxu0  ;;  %v1838_v58 = vpop.eup %1837 }
 0x172   : > { %v741_v59 = vadd.f32 %v740_v57, %v2395_v23  ;;  %1851 = vtanh.f32 %v739_v55 }
 0x173   : > { %v1840_v60 = vpop.eup %1839  ;;  %v742_v62 = vpop.f32.mrf.mxu0 }
 0x174   : > { %v1842_v63 = vpop.eup %1841  ;;  %v743_v0 = vadd.f32 %v742_v62, %v2393_v21  ;;  %v965_v1 = vpack.c.bf16 %v1840_v60, %v1836_v56  ;;  %1853 = vtanh.f32 %v741_v59 }
 0x175   : > { %v746_v2 = vpop.f32.mrf.mxu0  ;;  %v964_v3 = vpack.c.bf16 %v1838_v58, %v1842_v63 }
 0x176   : > { %1855 = vtanh.f32 %v743_v0  ;;  %1136 = vmatprep.mubr.bf16.mxu1 %v965_v1  ;;  %v747_v11 = vadd.f32 %v746_v2, %v2395_v23 }
 0x177   : > { %1857 = vtanh.f32 %v737_v61  ;;  %v748_v4 = vpop.f32.mrf.mxu0  ;;  %1137 = vmatmul.mubr.bf16.gmra.mxu1 %v964_v3  ;;  %v1844_v6 = vpop.eup %1843 }
 0x178   : > { %v749_v5 = vadd.f32 %v748_v4, %v2393_v21 }
 0x179   : > { %v750_v7 = vpop.f32.mrf.mxu0  ;;  %v1846_v8 = vpop.eup %1845 }
 0x17a   : > { %v751_v9 = vadd.f32 %v750_v7, %v2395_v23  ;;  %1859 = vtanh.f32 %v749_v5 }
 0x17b   : > { %v1848_v10 = vpop.eup %1847  ;;  %v752_v12 = vpop.f32.mrf.mxu0 }
 0x17c   : > { %v1850_v13 = vpop.eup %1849  ;;  %v753_v14 = vadd.f32 %v752_v12, %v2393_v21  ;;  %v967_v15 = vpack.c.bf16 %v1848_v10, %v1844_v6  ;;  %1861 = vtanh.f32 %v751_v9 }
 0x17d   : > { %v756_v16 = vpop.f32.mrf.mxu0  ;;  %v966_v17 = vpack.c.bf16 %v1846_v8, %v1850_v13 }
 0x17e   : > { %1863 = vtanh.f32 %v753_v14  ;;  %1144 = vmatprep.mubr.bf16.mxu1 %v967_v15  ;;  %v757_v27 = vadd.f32 %v756_v16, %v2395_v23 }
 0x17f   : > { %1865 = vtanh.f32 %v747_v11  ;;  %v758_v18 = vpop.f32.mrf.mxu0  ;;  %1145 = vmatmul.mubr.bf16.gmra.mxu1 %v966_v17  ;;  %v1852_v20 = vpop.eup %1851 }
 0x180   : > { %v759_v19 = vadd.f32 %v758_v18, %v2393_v21 }
 0x181   : > { %v760_v22 = vpop.f32.mrf.mxu0  ;;  %v1854_v24 = vpop.eup %1853 }
 0x182   : > { %v761_v25 = vadd.f32 %v760_v22, %v2395_v23  ;;  %1867 = vtanh.f32 %v759_v19 }
 0x183   : > { %v1856_v26 = vpop.eup %1855  ;;  %v762_v28 = vpop.f32.mrf.mxu0 }
 0x184   : > { %v1858_v29 = vpop.eup %1857  ;;  %v763_v30 = vadd.f32 %v762_v28, %v2393_v21  ;;  %v969_v31 = vpack.c.bf16 %v1856_v26, %v1852_v20  ;;  %1869 = vtanh.f32 %v761_v25 }
 0x185   : > { %v766_v32 = vpop.f32.mrf.mxu0  ;;  %v968_v33 = vpack.c.bf16 %v1854_v24, %v1858_v29 }
 0x186   : > { %1871 = vtanh.f32 %v763_v30  ;;  %1152 = vmatprep.mubr.bf16.mxu1 %v969_v31  ;;  %v767_v41 = vadd.f32 %v766_v32, %v2395_v23 }
 0x187   : > { %1873 = vtanh.f32 %v757_v27  ;;  %v768_v34 = vpop.f32.mrf.mxu0  ;;  %1153 = vmatmul.mubr.bf16.gmra.mxu1 %v968_v33  ;;  %v1860_v36 = vpop.eup %1859 }
 0x188   : > { %v769_v35 = vadd.f32 %v768_v34, %v2393_v21 }
 0x189   : > { %v770_v37 = vpop.f32.mrf.mxu0  ;;  %v1862_v38 = vpop.eup %1861 }
 0x18a   : > { %v771_v39 = vadd.f32 %v770_v37, %v2395_v23  ;;  %1875 = vtanh.f32 %v769_v35 }
 0x18b   : > { %v1864_v40 = vpop.eup %1863  ;;  %v772_v42 = vpop.f32.mrf.mxu0 }
 0x18c   : > { %v1866_v43 = vpop.eup %1865  ;;  %v773_v44 = vadd.f32 %v772_v42, %v2393_v21  ;;  %v971_v45 = vpack.c.bf16 %v1864_v40, %v1860_v36  ;;  %1877 = vtanh.f32 %v771_v39 }
 0x18d   : > { %v776_v46 = vpop.f32.mrf.mxu0  ;;  %v970_v47 = vpack.c.bf16 %v1862_v38, %v1866_v43 }
 0x18e   : > { %1879 = vtanh.f32 %v773_v44  ;;  %1160 = vmatprep.mubr.bf16.mxu1 %v971_v45  ;;  %v777_v55 = vadd.f32 %v776_v46, %v2395_v23 }
 0x18f   : > { %1881 = vtanh.f32 %v767_v41  ;;  %v778_v48 = vpop.f32.mrf.mxu0  ;;  %1161 = vmatmul.mubr.bf16.gmra.mxu1 %v970_v47  ;;  %v1868_v50 = vpop.eup %1867 }
 0x190   : > { %v779_v49 = vadd.f32 %v778_v48, %v2393_v21 }
 0x191   : > { %v780_v51 = vpop.f32.mrf.mxu0  ;;  %v1870_v52 = vpop.eup %1869 }
 0x192   : > { %v781_v53 = vadd.f32 %v780_v51, %v2395_v23  ;;  %1883 = vtanh.f32 %v779_v49 }
 0x193   : > { %v1872_v54 = vpop.eup %1871  ;;  %v782_v56 = vpop.f32.mrf.mxu0 }
 0x194   : > { %v1874_v57 = vpop.eup %1873  ;;  %v783_v58 = vadd.f32 %v782_v56, %v2393_v21  ;;  %v973_v59 = vpack.c.bf16 %v1872_v54, %v1868_v50  ;;  %1885 = vtanh.f32 %v781_v53 }
 0x195   : > { %v786_v60 = vpop.f32.mrf.mxu0  ;;  %v972_v61 = vpack.c.bf16 %v1870_v52, %v1874_v57 }
 0x196   : > { %1887 = vtanh.f32 %v783_v58  ;;  %1168 = vmatprep.mubr.bf16.mxu1 %v973_v59  ;;  %v787_v5 = vadd.f32 %v786_v60, %v2395_v23 }
 0x197   : > { %1889 = vtanh.f32 %v777_v55  ;;  %v788_v62 = vpop.f32.mrf.mxu0  ;;  %1169 = vmatmul.mubr.bf16.gmra.mxu1 %v972_v61  ;;  %v1876_v0 = vpop.eup %1875 }
 0x198   : > { %v789_v63 = vadd.f32 %v788_v62, %v2393_v21 }
 0x199   : > { %v790_v1 = vpop.f32.mrf.mxu0  ;;  %v1878_v2 = vpop.eup %1877 }
 0x19a   : > { %v791_v3 = vadd.f32 %v790_v1, %v2395_v23  ;;  %1891 = vtanh.f32 %v789_v63 }
 0x19b   : > { %v1880_v4 = vpop.eup %1879  ;;  %v792_v6 = vpop.f32.mrf.mxu0 }
 0x19c   : > { %v1882_v7 = vpop.eup %1881  ;;  %v793_v8 = vadd.f32 %v792_v6, %v2393_v21  ;;  %v975_v9 = vpack.c.bf16 %v1880_v4, %v1876_v0  ;;  %1893 = vtanh.f32 %v791_v3 }
 0x19d   : > { %v796_v10 = vpop.f32.mrf.mxu0  ;;  %v974_v11 = vpack.c.bf16 %v1878_v2, %v1882_v7 }
 0x19e   : > { %1895 = vtanh.f32 %v793_v8  ;;  %1176 = vmatprep.mubr.bf16.mxu1 %v975_v9  ;;  %v797_v19 = vadd.f32 %v796_v10, %v2395_v23 }
 0x19f   : > { %1897 = vtanh.f32 %v787_v5  ;;  %v798_v12 = vpop.f32.mrf.mxu0  ;;  %1177 = vmatmul.mubr.bf16.gmra.mxu1 %v974_v11  ;;  %v1884_v14 = vpop.eup %1883 }
 0x1a0   : > { %v799_v13 = vadd.f32 %v798_v12, %v2393_v21 }
 0x1a1   : > { %v800_v15 = vpop.f32.mrf.mxu0  ;;  %v1886_v16 = vpop.eup %1885 }
 0x1a2   : > { %v801_v17 = vadd.f32 %v800_v15, %v2395_v23  ;;  %1899 = vtanh.f32 %v799_v13 }
 0x1a3   : > { %v1888_v18 = vpop.eup %1887  ;;  %v802_v20 = vpop.f32.mrf.mxu0 }
 0x1a4   : > { %v1890_v22 = vpop.eup %1889  ;;  %v803_v24 = vadd.f32 %v802_v20, %v2393_v21  ;;  %v977_v25 = vpack.c.bf16 %v1888_v18, %v1884_v14  ;;  %1901 = vtanh.f32 %v801_v17 }
 0x1a5   : > { %v806_v26 = vpop.f32.mrf.mxu0  ;;  %v976_v27 = vpack.c.bf16 %v1886_v16, %v1890_v22 }
 0x1a6   : > { %1903 = vtanh.f32 %v803_v24  ;;  %1184 = vmatprep.mubr.bf16.mxu1 %v977_v25  ;;  %v807_v35 = vadd.f32 %v806_v26, %v2395_v23 }
 0x1a7   : > { %1905 = vtanh.f32 %v797_v19  ;;  %v808_v28 = vpop.f32.mrf.mxu0  ;;  %1185 = vmatmul.mubr.bf16.gmra.mxu1 %v976_v27  ;;  %v1892_v30 = vpop.eup %1891 }
 0x1a8   : > { %v809_v29 = vadd.f32 %v808_v28, %v2393_v21 }
 0x1a9   : > { %v810_v31 = vpop.f32.mrf.mxu0  ;;  %v1894_v32 = vpop.eup %1893 }
 0x1aa   : > { %v811_v33 = vadd.f32 %v810_v31, %v2395_v23  ;;  %1907 = vtanh.f32 %v809_v29 }
 0x1ab   : > { %v1896_v34 = vpop.eup %1895  ;;  %v812_v36 = vpop.f32.mrf.mxu0 }
 0x1ac   : > { %v1898_v37 = vpop.eup %1897  ;;  %v813_v38 = vadd.f32 %v812_v36, %v2393_v21  ;;  %v979_v39 = vpack.c.bf16 %v1896_v34, %v1892_v30  ;;  %1909 = vtanh.f32 %v811_v33 }
 0x1ad   : > { %v816_v40 = vpop.f32.mrf.mxu0  ;;  %v978_v41 = vpack.c.bf16 %v1894_v32, %v1898_v37 }
 0x1ae   : > { %1911 = vtanh.f32 %v813_v38  ;;  %1192 = vmatprep.mubr.bf16.mxu1 %v979_v39  ;;  %v817_v49 = vadd.f32 %v816_v40, %v2395_v23 }
 0x1af   : > { %1913 = vtanh.f32 %v807_v35  ;;  %v818_v42 = vpop.f32.mrf.mxu0  ;;  %1193 = vmatmul.mubr.bf16.gmra.mxu1 %v978_v41  ;;  %v1900_v44 = vpop.eup %1899 }
 0x1b0   : > { %v819_v43 = vadd.f32 %v818_v42, %v2393_v21 }
 0x1b1   : > { %v820_v45 = vpop.f32.mrf.mxu0  ;;  %v1902_v46 = vpop.eup %1901 }
 0x1b2   : > { %v821_v47 = vadd.f32 %v820_v45, %v2395_v23  ;;  %1915 = vtanh.f32 %v819_v43 }
 0x1b3   : > { %v1904_v48 = vpop.eup %1903  ;;  %v822_v50 = vpop.f32.mrf.mxu0 }
 0x1b4   : > { %v1906_v51 = vpop.eup %1905  ;;  %v823_v52 = vadd.f32 %v822_v50, %v2393_v21  ;;  %v981_v53 = vpack.c.bf16 %v1904_v48, %v1900_v44  ;;  %1917 = vtanh.f32 %v821_v47 }
 0x1b5   : > { %v826_v54 = vpop.f32.mrf.mxu0  ;;  %v980_v55 = vpack.c.bf16 %v1902_v46, %v1906_v51 }
 0x1b6   : > { %1919 = vtanh.f32 %v823_v52  ;;  %1200 = vmatprep.mubr.bf16.mxu1 %v981_v53  ;;  %v827_v63 = vadd.f32 %v826_v54, %v2395_v23 }
 0x1b7   : > { %1921 = vtanh.f32 %v817_v49  ;;  %v828_v56 = vpop.f32.mrf.mxu0  ;;  %1201 = vmatmul.mubr.bf16.gmra.mxu1 %v980_v55  ;;  %v1908_v58 = vpop.eup %1907 }
 0x1b8   : > { %v829_v57 = vadd.f32 %v828_v56, %v2393_v21 }
 0x1b9   : > { %v830_v59 = vpop.f32.mrf.mxu0  ;;  %v1910_v60 = vpop.eup %1909 }
 0x1ba   : > { %v831_v61 = vadd.f32 %v830_v59, %v2395_v23  ;;  %1923 = vtanh.f32 %v829_v57 }
 0x1bb   : > { %v1912_v62 = vpop.eup %1911  ;;  %v832_v0 = vpop.f32.mrf.mxu0 }
 0x1bc   : > { %v1914_v1 = vpop.eup %1913  ;;  %v833_v2 = vadd.f32 %v832_v0, %v2393_v21  ;;  %v983_v3 = vpack.c.bf16 %v1912_v62, %v1908_v58  ;;  %1925 = vtanh.f32 %v831_v61 }
 0x1bd   : > { %v836_v4 = vpop.f32.mrf.mxu0  ;;  %v982_v5 = vpack.c.bf16 %v1910_v60, %v1914_v1  ;;  %v2464_v60 = vld [vmem:[%s2588_s4] ss:$0 sm:$0xff] }
 0x1be   : > { %1927 = vtanh.f32 %v833_v2  ;;  %1208 = vmatprep.mubr.bf16.mxu1 %v983_v3  ;;  %v837_v13 = vadd.f32 %v836_v4, %v2395_v23 }
 0x1bf   : > { %1929 = vtanh.f32 %v827_v63  ;;  %v838_v6 = vpop.f32.mrf.mxu0  ;;  %1209 = vmatmul.mubr.bf16.gmra.mxu1 %v982_v5  ;;  %v1916_v8 = vpop.eup %1915 }
 0x1c0   : > { %v839_v7 = vadd.f32 %v838_v6, %v2393_v21 }
 0x1c1   : > { %v840_v9 = vpop.f32.mrf.mxu0  ;;  %v1918_v10 = vpop.eup %1917 }
 0x1c2   : > { %v841_v11 = vadd.f32 %v840_v9, %v2395_v23  ;;  %1931 = vtanh.f32 %v839_v7 }
 0x1c3   : > { %v1920_v12 = vpop.eup %1919  ;;  %v842_v14 = vpop.f32.mrf.mxu0 }
 0x1c4   : > { %v1922_v15 = vpop.eup %1921  ;;  %v843_v16 = vadd.f32 %v842_v14, %v2393_v21  ;;  %v985_v17 = vpack.c.bf16 %v1920_v12, %v1916_v8  ;;  %1933 = vtanh.f32 %v841_v11 }
 0x1c5   : > { %v846_v18 = vpop.f32.mrf.mxu0  ;;  %v984_v19 = vpack.c.bf16 %v1918_v10, %v1922_v15 }
 0x1c6   : > { %1935 = vtanh.f32 %v843_v16  ;;  %1216 = vmatprep.mubr.bf16.mxu1 %v985_v17  ;;  %v847_v29 = vadd.f32 %v846_v18, %v2395_v23 }
 0x1c7   : > { %1937 = vtanh.f32 %v837_v13  ;;  %v848_v20 = vpop.f32.mrf.mxu0  ;;  %1217 = vmatmul.mubr.bf16.gmra.mxu1 %v984_v19  ;;  %v1924_v24 = vpop.eup %1923 }
 0x1c8   : > { %v849_v22 = vadd.f32 %v848_v20, %v2393_v21 }
 0x1c9   : > { %v850_v25 = vpop.f32.mrf.mxu0  ;;  %v1926_v26 = vpop.eup %1925 }
 0x1ca   : > { %v851_v27 = vadd.f32 %v850_v25, %v2395_v23  ;;  %1939 = vtanh.f32 %v849_v22 }
 0x1cb   : > { %v1928_v28 = vpop.eup %1927  ;;  %v852_v30 = vpop.f32.mrf.mxu0 }
 0x1cc   : > { %v1930_v31 = vpop.eup %1929  ;;  %v853_v32 = vadd.f32 %v852_v30, %v2393_v21  ;;  %v987_v33 = vpack.c.bf16 %v1928_v28, %v1924_v24  ;;  %1941 = vtanh.f32 %v851_v27 }
 0x1cd   : > { %v856_v34 = vpop.f32.mrf.mxu0  ;;  %v986_v35 = vpack.c.bf16 %v1926_v26, %v1930_v31 }
 0x1ce   : > { %1943 = vtanh.f32 %v853_v32  ;;  %1224 = vmatprep.mubr.bf16.mxu1 %v987_v33  ;;  %v857_v43 = vadd.f32 %v856_v34, %v2395_v23 }
 0x1cf   : > { %1945 = vtanh.f32 %v847_v29  ;;  %v858_v36 = vpop.f32.mrf.mxu0  ;;  %1225 = vmatmul.mubr.bf16.gmra.mxu1 %v986_v35  ;;  %v1932_v38 = vpop.eup %1931 }
 0x1d0   : > { %v859_v37 = vadd.f32 %v858_v36, %v2393_v21 }
 0x1d1   : > { %v860_v39 = vpop.f32.mrf.mxu0  ;;  %v1934_v40 = vpop.eup %1933 }
 0x1d2   : > { %v861_v41 = vadd.f32 %v860_v39, %v2395_v23  ;;  %1947 = vtanh.f32 %v859_v37 }
 0x1d3   : > { %v1936_v42 = vpop.eup %1935  ;;  %v862_v44 = vpop.f32.mrf.mxu0 }
 0x1d4   : > { %v1938_v45 = vpop.eup %1937  ;;  %v863_v46 = vadd.f32 %v862_v44, %v2393_v21  ;;  %v989_v47 = vpack.c.bf16 %v1936_v42, %v1932_v38  ;;  %1949 = vtanh.f32 %v861_v41 }
 0x1d5   : > { %v988_v48 = vpack.c.bf16 %v1934_v40, %v1938_v45 }
 0x1d6   : > { %1951 = vtanh.f32 %v863_v46  ;;  %1232 = vmatprep.mubr.bf16.mxu1 %v989_v47 }
 0x1d7   : > { %1953 = vtanh.f32 %v857_v43  ;;  %1233 = vmatmul.mubr.bf16.gmra.mxu1 %v988_v48  ;;  %v1940_v49 = vpop.eup %1939 }
 0x1d9   : > { %v1942_v50 = vpop.eup %1941 }
 0x1db   : > { %v1944_v51 = vpop.eup %1943 }
 0x1dc   : > { %v1946_v52 = vpop.eup %1945  ;;  %v991_v53 = vpack.c.bf16 %v1944_v51, %v1940_v49 }
 0x1dd   : > { %v990_v54 = vpack.c.bf16 %v1942_v50, %v1946_v52 }
 0x1de   : > { %1240 = vmatprep.mubr.bf16.mxu1 %v991_v53 }
 0x1df   : > { %1241 = vmatmul.mubr.bf16.gmra.mxu1 %v990_v54  ;;  %v1948_v23 = vpop.eup %1947 }
 0x1e1   : > { %v1950_v55 = vpop.eup %1949 }
 0x1e3   : > { %v1952_v56 = vpop.eup %1951 }
 0x1e4   : > { %v1954_v57 = vpop.eup %1953  ;;  %v993_v21 = vpack.c.bf16 %v1952_v56, %v1948_v23 }
 0x1e5   : > { %v992_v58 = vpack.c.bf16 %v1950_v55, %v1954_v57 }
 0x1e6   : > { %1248 = vmatprep.mubr.bf16.mxu1 %v993_v21 }
 0x1e7   : > { %1249 = vmatmul.mubr.bf16.gmra.mxu1 %v992_v58 }
 0x22f   : > { %v1546_v59 = vpop.f32.mrf.mxu1 }
 0x231   : > { %v1547_v61 = vpop.f32.mrf.mxu1 }
 0x232   : > { %v1548_v62 = vadd.f32 %v1547_v61, %v1546_v59 }
 0x233   : > { %v1549_v63 = vpop.f32.mrf.mxu1 }
 0x234   : > { %v1131_v0 = vadd.f32 %v1548_v62, %v2464_v60 }
 0x235   : > { %v1550_v1 = vpop.f32.mrf.mxu1 }
 0x236   : > { %1955 = vtanh.f32 %v1131_v0  ;;  %v1551_v2 = vadd.f32 %v1550_v1, %v1549_v63 }
 0x237   : > { %v1552_v3 = vpop.f32.mrf.mxu1 }
 0x238   : > { %v1134_v4 = vadd.f32 %v1551_v2, %v2464_v60 }
 0x239   : > { %v1553_v5 = vpop.f32.mrf.mxu1 }
 0x23a   : > { %1957 = vtanh.f32 %v1134_v4  ;;  %v1554_v6 = vadd.f32 %v1553_v5, %v1552_v3 }
 0x23b   : > { %v1555_v7 = vpop.f32.mrf.mxu1 }
 0x23c   : > { %v1139_v8 = vadd.f32 %v1554_v6, %v2464_v60 }
 0x23d   : > { %v1556_v9 = vpop.f32.mrf.mxu1 }
 0x23e   : > { %1959 = vtanh.f32 %v1139_v8  ;;  %v1557_v10 = vadd.f32 %v1556_v9, %v1555_v7 }
 0x23f   : > { %v1558_v11 = vpop.f32.mrf.mxu1 }
 0x240   : > { %v1142_v12 = vadd.f32 %v1557_v10, %v2464_v60 }
 0x241   : > { %v1559_v13 = vpop.f32.mrf.mxu1 }
 0x242   : > { %1961 = vtanh.f32 %v1142_v12  ;;  %v1560_v14 = vadd.f32 %v1559_v13, %v1558_v11 }
 0x243   : > { %v1956_v15 = vpop.eup %1955  ;;  %v1561_v16 = vpop.f32.mrf.mxu1 }
 0x244   : > { %1289 = vst [vmem:[%s2472_s14] sm:$0xff] %v1956_v15  ;;  %v1147_v17 = vadd.f32 %v1560_v14, %v2464_v60 }
 0x245   : > { %v1562_v18 = vpop.f32.mrf.mxu1 }
 0x246   : > { %1963 = vtanh.f32 %v1147_v17  ;;  %v1563_v19 = vadd.f32 %v1562_v18, %v1561_v16 }
 0x247   : > { %v1958_v20 = vpop.eup %1957  ;;  %v1564_v22 = vpop.f32.mrf.mxu1 }
 0x248   : > { %1290 = vst [vmem:[%s2472_s14 + $0x8] sm:$0xff] %v1958_v20  ;;  %v1150_v24 = vadd.f32 %v1563_v19, %v2464_v60 }
 0x249   : > { %v1565_v25 = vpop.f32.mrf.mxu1 }
 0x24a   : > { %1965 = vtanh.f32 %v1150_v24  ;;  %v1566_v26 = vadd.f32 %v1565_v25, %v1564_v22 }
 0x24b   : > { %v1960_v27 = vpop.eup %1959  ;;  %v1567_v28 = vpop.f32.mrf.mxu1 }
 0x24c   : > { %1291 = vst [vmem:[%s2472_s14 + $0x10] sm:$0xff] %v1960_v27  ;;  %v1155_v29 = vadd.f32 %v1566_v26, %v2464_v60 }
 0x24d   : > { %v1568_v30 = vpop.f32.mrf.mxu1 }
 0x24e   : > { %1967 = vtanh.f32 %v1155_v29  ;;  %v1569_v31 = vadd.f32 %v1568_v30, %v1567_v28 }
 0x24f   : > { %v1962_v32 = vpop.eup %1961  ;;  %v1570_v33 = vpop.f32.mrf.mxu1 }
 0x250   : > { %1292 = vst [vmem:[%s2472_s14 + $0x18] sm:$0xff] %v1962_v32  ;;  %v1158_v34 = vadd.f32 %v1569_v31, %v2464_v60 }
 0x251   : > { %v1571_v35 = vpop.f32.mrf.mxu1 }
 0x252   : > { %1969 = vtanh.f32 %v1158_v34  ;;  %v1572_v36 = vadd.f32 %v1571_v35, %v1570_v33 }
 0x253   : > { %v1964_v37 = vpop.eup %1963  ;;  %v1573_v38 = vpop.f32.mrf.mxu1 }
 0x254   : > { %1293 = vst [vmem:[%s2472_s14 + $0x20] sm:$0xff] %v1964_v37  ;;  %v1163_v39 = vadd.f32 %v1572_v36, %v2464_v60 }
 0x255   : > { %v1574_v40 = vpop.f32.mrf.mxu1 }
 0x256   : > { %1971 = vtanh.f32 %v1163_v39  ;;  %v1575_v41 = vadd.f32 %v1574_v40, %v1573_v38 }
 0x257   : > { %v1966_v42 = vpop.eup %1965  ;;  %v1576_v43 = vpop.f32.mrf.mxu1 }
 0x258   : > { %1294 = vst [vmem:[%s2472_s14 + $0x28] sm:$0xff] %v1966_v42  ;;  %v1166_v44 = vadd.f32 %v1575_v41, %v2464_v60 }
 0x259   : > { %v1577_v45 = vpop.f32.mrf.mxu1 }
 0x25a   : > { %1973 = vtanh.f32 %v1166_v44  ;;  %v1578_v46 = vadd.f32 %v1577_v45, %v1576_v43 }
 0x25b   : > { %v1968_v47 = vpop.eup %1967  ;;  %v1579_v48 = vpop.f32.mrf.mxu1 }
 0x25c   : > { %1295 = vst [vmem:[%s2472_s14 + $0x30] sm:$0xff] %v1968_v47  ;;  %v1171_v49 = vadd.f32 %v1578_v46, %v2464_v60 }
 0x25d   : > { %v1580_v50 = vpop.f32.mrf.mxu1 }
 0x25e   : > { %1975 = vtanh.f32 %v1171_v49  ;;  %v1581_v51 = vadd.f32 %v1580_v50, %v1579_v48 }
 0x25f   : > { %v1970_v52 = vpop.eup %1969  ;;  %v1582_v53 = vpop.f32.mrf.mxu1 }
 0x260   : > { %1296 = vst [vmem:[%s2472_s14 + $0x38] sm:$0xff] %v1970_v52  ;;  %v1174_v54 = vadd.f32 %v1581_v51, %v2464_v60 }
 0x261   : > { %v1583_v23 = vpop.f32.mrf.mxu1 }
 0x262   : > { %1977 = vtanh.f32 %v1174_v54  ;;  %v1584_v55 = vadd.f32 %v1583_v23, %v1582_v53 }
 0x263   : > { %v1972_v56 = vpop.eup %1971  ;;  %v1585_v57 = vpop.f32.mrf.mxu1 }
 0x264   : > { %1297 = vst [vmem:[%s2472_s14 + $0x40] sm:$0xff] %v1972_v56  ;;  %v1179_v21 = vadd.f32 %v1584_v55, %v2464_v60 }
 0x265   : > { %v1586_v58 = vpop.f32.mrf.mxu1 }
 0x266   : > { %1979 = vtanh.f32 %v1179_v21  ;;  %v1587_v59 = vadd.f32 %v1586_v58, %v1585_v57 }
 0x267   : > { %v1974_v61 = vpop.eup %1973  ;;  %v1588_v62 = vpop.f32.mrf.mxu1 }
 0x268   : > { %1298 = vst [vmem:[%s2472_s14 + $0x48] sm:$0xff] %v1974_v61  ;;  %v1182_v63 = vadd.f32 %v1587_v59, %v2464_v60 }
 0x269   : > { %v1589_v0 = vpop.f32.mrf.mxu1 }
 0x26a   : > { %1981 = vtanh.f32 %v1182_v63  ;;  %v1590_v1 = vadd.f32 %v1589_v0, %v1588_v62 }
 0x26b   : > { %v1976_v2 = vpop.eup %1975  ;;  %v1591_v3 = vpop.f32.mrf.mxu1 }
 0x26c   : > { %1299 = vst [vmem:[%s2472_s14 + $0x50] sm:$0xff] %v1976_v2  ;;  %v1187_v4 = vadd.f32 %v1590_v1, %v2464_v60 }
 0x26d   : > { %v1592_v5 = vpop.f32.mrf.mxu1 }
 0x26e   : > { %1983 = vtanh.f32 %v1187_v4  ;;  %v1593_v6 = vadd.f32 %v1592_v5, %v1591_v3 }
 0x26f   : > { %v1978_v7 = vpop.eup %1977  ;;  %v1594_v8 = vpop.f32.mrf.mxu1 }
 0x270   : > { %1300 = vst [vmem:[%s2472_s14 + $0x58] sm:$0xff] %v1978_v7  ;;  %v1190_v9 = vadd.f32 %v1593_v6, %v2464_v60 }
 0x271   : > { %v1595_v10 = vpop.f32.mrf.mxu1 }
 0x272   : > { %1985 = vtanh.f32 %v1190_v9  ;;  %v1596_v11 = vadd.f32 %v1595_v10, %v1594_v8 }
 0x273   : > { %v1980_v12 = vpop.eup %1979  ;;  %v1597_v13 = vpop.f32.mrf.mxu1 }
 0x274   : > { %1301 = vst [vmem:[%s2472_s14 + $0x60] sm:$0xff] %v1980_v12  ;;  %v1195_v14 = vadd.f32 %v1596_v11, %v2464_v60 }
 0x275   : > { %v1598_v15 = vpop.f32.mrf.mxu1 }
 0x276   : > { %1987 = vtanh.f32 %v1195_v14  ;;  %v1599_v16 = vadd.f32 %v1598_v15, %v1597_v13 }
 0x277   : > { %v1982_v17 = vpop.eup %1981  ;;  %v1600_v18 = vpop.f32.mrf.mxu1 }
 0x278   : > { %1302 = vst [vmem:[%s2472_s14 + $0x68] sm:$0xff] %v1982_v17  ;;  %v1198_v19 = vadd.f32 %v1599_v16, %v2464_v60 }
 0x279   : > { %v1601_v20 = vpop.f32.mrf.mxu1 }
 0x27a   : > { %1989 = vtanh.f32 %v1198_v19  ;;  %v1602_v22 = vadd.f32 %v1601_v20, %v1600_v18 }
 0x27b   : > { %v1984_v24 = vpop.eup %1983  ;;  %v1603_v25 = vpop.f32.mrf.mxu1 }
 0x27c   : > { %1303 = vst [vmem:[%s2472_s14 + $0x70] sm:$0xff] %v1984_v24  ;;  %v1203_v26 = vadd.f32 %v1602_v22, %v2464_v60 }
 0x27d   : > { %v1604_v27 = vpop.f32.mrf.mxu1 }
 0x27e   : > { %1991 = vtanh.f32 %v1203_v26  ;;  %v1605_v28 = vadd.f32 %v1604_v27, %v1603_v25 }
 0x27f   : > { %v1986_v29 = vpop.eup %1985  ;;  %v1606_v30 = vpop.f32.mrf.mxu1 }
 0x280   : > { %1304 = vst [vmem:[%s2472_s14 + $0x78] sm:$0xff] %v1986_v29  ;;  %v1206_v31 = vadd.f32 %v1605_v28, %v2464_v60 }
 0x281   : > { %v1607_v32 = vpop.f32.mrf.mxu1 }
 0x282   : > { %1993 = vtanh.f32 %v1206_v31  ;;  %v1608_v33 = vadd.f32 %v1607_v32, %v1606_v30 }
 0x283   : > { %v1988_v34 = vpop.eup %1987  ;;  %v1609_v35 = vpop.f32.mrf.mxu1 }
 0x284   : > { %1305 = vst [vmem:[%s2472_s14 + $0x80] sm:$0xff] %v1988_v34  ;;  %v1211_v36 = vadd.f32 %v1608_v33, %v2464_v60 }
 0x285   : > { %v1610_v37 = vpop.f32.mrf.mxu1 }
 0x286   : > { %1995 = vtanh.f32 %v1211_v36  ;;  %v1611_v38 = vadd.f32 %v1610_v37, %v1609_v35 }
 0x287   : > { %v1990_v39 = vpop.eup %1989  ;;  %v1612_v40 = vpop.f32.mrf.mxu1 }
 0x288   : > { %1306 = vst [vmem:[%s2472_s14 + $0x88] sm:$0xff] %v1990_v39  ;;  %v1214_v41 = vadd.f32 %v1611_v38, %v2464_v60 }
 0x289   : > { %v1613_v42 = vpop.f32.mrf.mxu1 }
 0x28a   : > { %1997 = vtanh.f32 %v1214_v41  ;;  %v1614_v43 = vadd.f32 %v1613_v42, %v1612_v40 }
 0x28b   : > { %v1992_v44 = vpop.eup %1991  ;;  %v1615_v45 = vpop.f32.mrf.mxu1 }
 0x28c   : > { %1307 = vst [vmem:[%s2472_s14 + $0x90] sm:$0xff] %v1992_v44  ;;  %v1219_v46 = vadd.f32 %v1614_v43, %v2464_v60 }
 0x28d   : > { %v1616_v47 = vpop.f32.mrf.mxu1 }
 0x28e   : > { %1999 = vtanh.f32 %v1219_v46  ;;  %v1617_v48 = vadd.f32 %v1616_v47, %v1615_v45 }
 0x28f   : > { %v1994_v49 = vpop.eup %1993  ;;  %v1618_v50 = vpop.f32.mrf.mxu1 }
 0x290   : > { %1308 = vst [vmem:[%s2472_s14 + $0x98] sm:$0xff] %v1994_v49  ;;  %v1222_v51 = vadd.f32 %v1617_v48, %v2464_v60 }
 0x291   : > { %v1619_v52 = vpop.f32.mrf.mxu1 }
 0x292   : > { %2001 = vtanh.f32 %v1222_v51  ;;  %v1620_v53 = vadd.f32 %v1619_v52, %v1618_v50 }
 0x293   : > { %v1996_v54 = vpop.eup %1995  ;;  %v1621_v23 = vpop.f32.mrf.mxu1 }
 0x294   : > { %1309 = vst [vmem:[%s2472_s14 + $0xa0] sm:$0xff] %v1996_v54  ;;  %v1227_v55 = vadd.f32 %v1620_v53, %v2464_v60 }
 0x295   : > { %v1622_v56 = vpop.f32.mrf.mxu1 }
 0x296   : > { %2003 = vtanh.f32 %v1227_v55  ;;  %v1623_v57 = vadd.f32 %v1622_v56, %v1621_v23 }
 0x297   : > { %v1998_v21 = vpop.eup %1997  ;;  %v1624_v58 = vpop.f32.mrf.mxu1 }
 0x298   : > { %1310 = vst [vmem:[%s2472_s14 + $0xa8] sm:$0xff] %v1998_v21  ;;  %v1230_v59 = vadd.f32 %v1623_v57, %v2464_v60 }
 0x299   : > { %v1625_v61 = vpop.f32.mrf.mxu1 }
 0x29a   : > { %2005 = vtanh.f32 %v1230_v59  ;;  %v1626_v62 = vadd.f32 %v1625_v61, %v1624_v58 }
 0x29b   : > { %v2000_v63 = vpop.eup %1999  ;;  %v1627_v0 = vpop.f32.mrf.mxu1 }
 0x29c   : > { %1311 = vst [vmem:[%s2472_s14 + $0xb0] sm:$0xff] %v2000_v63  ;;  %v1235_v1 = vadd.f32 %v1626_v62, %v2464_v60 }
 0x29d   : > { %v1628_v2 = vpop.f32.mrf.mxu1 }
 0x29e   : > { %2007 = vtanh.f32 %v1235_v1  ;;  %v1629_v3 = vadd.f32 %v1628_v2, %v1627_v0 }
 0x29f   : > { %v2002_v4 = vpop.eup %2001  ;;  %v1630_v5 = vpop.f32.mrf.mxu1 }
 0x2a0   : > { %1312 = vst [vmem:[%s2472_s14 + $0xb8] sm:$0xff] %v2002_v4  ;;  %v1238_v6 = vadd.f32 %v1629_v3, %v2464_v60 }
 0x2a1   : > { %v1631_v7 = vpop.f32.mrf.mxu1 }
 0x2a2   : > { %2009 = vtanh.f32 %v1238_v6  ;;  %v1632_v8 = vadd.f32 %v1631_v7, %v1630_v5 }
 0x2a3   : > { %v2004_v9 = vpop.eup %2003  ;;  %v1633_v10 = vpop.f32.mrf.mxu1 }
 0x2a4   : > { %1313 = vst [vmem:[%s2472_s14 + $0xc0] sm:$0xff] %v2004_v9  ;;  %v1243_v11 = vadd.f32 %v1632_v8, %v2464_v60 }
 0x2a5   : > { %v1634_v12 = vpop.f32.mrf.mxu1 }
 0x2a6   : > { %2011 = vtanh.f32 %v1243_v11  ;;  %v1635_v13 = vadd.f32 %v1634_v12, %v1633_v10 }
 0x2a7   : > { %v2006_v14 = vpop.eup %2005  ;;  %v1636_v15 = vpop.f32.mrf.mxu1 }
 0x2a8   : > { %1314 = vst [vmem:[%s2472_s14 + $0xc8] sm:$0xff] %v2006_v14  ;;  %v1246_v16 = vadd.f32 %v1635_v13, %v2464_v60 }
 0x2a9   : > { %v1637_v17 = vpop.f32.mrf.mxu1 }
 0x2aa   : > { %2013 = vtanh.f32 %v1246_v16  ;;  %v1638_v18 = vadd.f32 %v1637_v17, %v1636_v15 }
 0x2ab   : > { %v2008_v19 = vpop.eup %2007  ;;  %v1639_v20 = vpop.f32.mrf.mxu1 }
 0x2ac   : > { %1315 = vst [vmem:[%s2472_s14 + $0xd0] sm:$0xff] %v2008_v19  ;;  %v1251_v22 = vadd.f32 %v1638_v18, %v2464_v60 }
 0x2ad   : > { %v1640_v24 = vpop.f32.mrf.mxu1 }
 0x2ae   : > { %2015 = vtanh.f32 %v1251_v22  ;;  %v1641_v25 = vadd.f32 %v1640_v24, %v1639_v20 }
 0x2af   : > { %v2010_v26 = vpop.eup %2009 }
 0x2b0   : > { %1316 = vst [vmem:[%s2472_s14 + $0xd8] sm:$0xff] %v2010_v26  ;;  %v1254_v27 = vadd.f32 %v1641_v25, %v2464_v60 }
 0x2b2   : > { %2017 = vtanh.f32 %v1254_v27 }
 0x2b3   : > { %v2012_v28 = vpop.eup %2011 }
 0x2b4   : > { %1317 = vst [vmem:[%s2472_s14 + $0xe0] sm:$0xff] %v2012_v28 }
 0x2b7   : > { %v2014_v29 = vpop.eup %2013 }
 0x2b8   : > { %1318 = vst [vmem:[%s2472_s14 + $0xe8] sm:$0xff] %v2014_v29 }
 0x2bb   : > { %v2016_v30 = vpop.eup %2015 }
 0x2bc   : > { %1319 = vst [vmem:[%s2472_s14 + $0xf0] sm:$0xff] %v2016_v30 }
 0x2bf   : > { %v2018_v60 = vpop.eup %2017 }
 0x2c0   : > { %1320 = vst [vmem:[%s2472_s14 + $0xf8] sm:$0xff] %v2018_v60 }
 0x2c1   : > { %2112 = shalt.err (!%p2109_p3)
}
 0x2c2   : > { %s2113_s15 = scalar_lea.hbm %s2538_s13, 4096  ;;  %s2117_s9 = scalar_lea.hbm %s2589_s5, 8192 }
 0x2c3   : > { %p2114_p11 = scmp.ne.s32.totalorder %s2538_s13, %s2113_s15  ;;  %p2118_p4 = scmp.lt.s32.totalorder %s2538_s13, %s2589_s5 }
 0x2c4   : > { %p2119_p6 = scmp.lt.s32.totalorder %s2117_s9, %s2113_s15 }
 0x2c5   : > { %p2115_p9 = pnand %p2114_p11, %p2606_p2 }
 0x2c6   : > { %p2120_p8 = por %p2119_p6, %p2118_p4 }
 0x2c7   : > { %p2116_p1 = pneg %p2115_p9 }
 0x2c9   : > { %p2121_p10 = pnand %p2120_p8, %p2116_p1 }
 0x2cb   : > { %2124 = shalt.err (!%p2121_p10)
}
 0x2cc   : > { %s2177_s16 = smov 128   ;;  %s2178_s11 = smov 8  }
 0x2cd   : > { %1652 = dma.vmem_to_hbm [thread:$0]  (%p2606_p2), %s2540_s10, 4096, %s2538_s13, %s1322_s27, %s2177_s16, %s2177_s16, %s2178_s11  }
 0x2ce PF: > { %s1350_s29 = sand.u32 1, %s2155_s18   ;;  %p2607_p7 = scmp.ne.s32.totalorder %s2596_s25, 0 }
 0x2cf   : > { %p2608_p12 = scmp.ge.s32.totalorder %s2167_s21, 2  ;;  %s1351_s23 = scalar_lea.sflag [#allocation4], %s1350_s29 }
 0x2d1   : > { %p1666_p13 = pnand %p2608_p12, %p2607_p7 }
 0x2d3   : > { %p1667_p0 = pneg %p1666_p13 }
 0x2d5   : > { %2150 = dma.done.wait (%p1667_p0), %s1351_s23, 4096  }
 0x2d6   : > { %2152 = vsyncadd (%p1667_p0), %s1351_s23, 4294963200  ;;  %p19_p5 = scmp.ge.s32.totalorder %s2284_s17, 4   ;;  %s2609_s18 = smov %s2159_s19 }
 0x2d7   : > { %s2610_s19 = smov %s2163_s20  ;;  %s2611_s20 = smov %s2293_s28 }
 0x2d8   : > { %s2612_s21 = smov %s2284_s17  ;;  %21 = sbr.rel (!%p19_p5) target bundleno = 6 (0x6), region = 93 }
 0x2dd   :  { %1356 = vsyncpa [#allocation3], 1 }
 0x2de   :  { %1358 = vsyncpa [#allocation3 + $0x1], 1 }
 0x2df   :  { %1359 = vsyncpa [#allocation6], 1 }
 0x2e0   :  { %1360 = vsyncpa [#allocation4], 1 }
 0x2e1   :  { %1362 = vsyncpa [#allocation4 + $0x1], 1 }

</bundles_post_ra>
